<compile_context>
chip_gen: v7x
topology: tpu7x:2x2x1
jax: 0.10.0
libtpu: 0.0.40
codegen_flags: <defaults>
</compile_context>

<pallas_src>
import math

import jax
import jax.numpy as jnp
from jax.experimental import pallas as pl
from jax.experimental.pallas import tpu as pltpu


def _positional_encoding(d_model, max_len):
    """Same formula as the torch PositionalEncoding buffer (assumes even d_model)."""
    pos = jnp.arange(max_len, dtype=jnp.float32)[:, None]
    div = jnp.exp(
        jnp.arange(0, d_model, 2, dtype=jnp.float32) * (-(math.log(10000.0) / d_model))
    )
    pe = jnp.zeros((max_len, d_model), jnp.float32)
    pe = pe.at[:, 0::2].set(jnp.sin(pos * div))
    pe = pe.at[:, 1::2].set(jnp.cos(pos * div))
    return pe


def _make_kernel(P, size, step, N):
    """Kernel for one batch element: patch gather + single MXU matmul + PE add."""

    def kernel(x_ref, w_ref, pe_ref, o_ref):
        # x_ref : (T, N)      raw time-major slab for this batch element
        # w_ref : (size, d)   nn.Linear weight, sliced to live columns + transposed
        # pe_ref: (P, d)      positional-encoding table
        # o_ref : (P, N, d)   output block already in the module's final layout
        xt = x_ref[...].T                      # (N, T): one in-VMEM transpose per step
        w = w_ref[...]                         # (size, d)
        # Gather every patch window into one (P*N, size) operand so the whole batch
        # element is a single MXU matmul (weights pushed once) instead of P tiny ones.
        xall = jnp.concatenate(
            [xt[:, p * step: p * step + size] for p in range(P)], axis=0
        )                                      # (P*N, size)
        y = jnp.dot(
            xall, w,
            precision=jax.lax.Precision.HIGHEST,
            preferred_element_type=jnp.float32,
        )                                      # (P*N, d)
        pe = pe_ref[...]                       # (P, d)
        for p in range(P):                     # static, unrolled; small VPU add + store
            o_ref[p, :, :] = (
                y[p * N: (p + 1) * N, :] + pe[p: p + 1, :]
            ).astype(o_ref.dtype)

    return kernel


def patch_embedding_flow(x, weight, *, patch_len, stride, d_model, max_len=100):
    """Pallas implementation of PatchEmbedding_flow.forward.

    x      : (B, T, N, 1) float32
    weight : (d_model, patch_len) float32   (nn.Linear(patch_len, d_model).weight)
    returns: (B, num_patches, N, d_model) float32
    """
    B, T, N, _ = x.shape
    xs = x[..., 0].astype(jnp.float32)        # (B, T, N) — trailing squeeze is free

    # Branch logic identical to the torch forward.
    if T == 288:
        size, step = patch_len, stride
    else:
        gap = 288 // T
        size, step = patch_len // gap, stride // gap
    P = (T - size) // step + 1
    assert P <= max_len, "num_patches exceeds PositionalEncoding max_len"

    # torch zero-pads each patch up to patch_len in the T != 288 branch; multiplying
    # the zero columns is equivalent to using only the first `size` weight columns.
    w_eff = jnp.asarray(weight, jnp.float32)[:, :size].T      # (size, d_model)

    pe = _positional_encoding(d_model, max_len)[:P]           # (P, d_model)

    flops = 2 * B * P * N * size * d_model
    bytes_accessed = 4 * (B * T * N + size * d_model + P * d_model + B * P * N * d_model)

    out = pl.pallas_call(
        _make_kernel(P, size, step, N),
        out_shape=jax.ShapeDtypeStruct((B, P, N, d_model), jnp.float32),
        grid_spec=pltpu.PrefetchScalarGridSpec(
            num_scalar_prefetch=0,
            grid=(B,),
            in_specs=[
                pl.BlockSpec((None, T, N), lambda b: (b, 0, 0)),        # x slab per batch
                pl.BlockSpec((size, d_model), lambda b: (0, 0)),        # weight (constant)
                pl.BlockSpec((P, d_model), lambda b: (0, 0)),           # pe     (constant)
            ],
            out_specs=pl.BlockSpec((None, P, N, d_model), lambda b: (b, 0, 0, 0)),
        ),
        compiler_params=pltpu.CompilerParams(dimension_semantics=("parallel",)),
        cost_estimate=pl.CostEstimate(
            flops=flops, transcendentals=0, bytes_accessed=bytes_accessed
        ),
    )(xs, w_eff, pe)
    return out                                                # (B, P, N, d_model)


def _reference(x, weight, *, patch_len, stride, d_model, max_len=100):
    # Pure-JAX replica of the torch forward (unfold + zero-pad + full-weight matmul).
    B, T, N, _ = x.shape
    xs = jnp.transpose(jnp.squeeze(x, -1), (0, 2, 1))
    if T == 288:
        size, step, pad = patch_len, stride, 0
    else:
        gap = 288 // T
        size, step = patch_len // gap, stride // gap
        pad = patch_len - size
    P = (T - size) // step + 1
    patches = jnp.stack([xs[..., i * step: i * step + size] for i in range(P)], axis=2)
    if pad:
        patches = jnp.pad(patches, ((0, 0), (0, 0), (0, 0), (0, pad)))
    emb = jnp.einsum(
        "bnpl,dl->bnpd", patches, weight, precision=jax.lax.Precision.HIGHEST
    )
    emb = emb + _positional_encoding(d_model, max_len)[:P][None, None]
    return jnp.transpose(emb, (0, 2, 1, 3))


if __name__ == "__main__":
    d_model, patch_len, stride = 32, 12, 12
    key = jax.random.PRNGKey(0)

    # Exercise both forward branches: T == 288 (plain unfold) and T != 288 (gap path).
    for (B, T, N) in [(2, 288, 16), (2, 144, 16)]:
        key, kx, kw = jax.random.split(key, 3)
        x = jax.random.normal(kx, (B, T, N, 1), dtype=jnp.float32)
        bound = 1.0 / math.sqrt(patch_len)
        weight = jax.random.uniform(
            kw, (d_model, patch_len), minval=-bound, maxval=bound, dtype=jnp.float32
        )

        out = patch_embedding_flow(
            x, weight, patch_len=patch_len, stride=stride, d_model=d_model
        )
        out = jax.block_until_ready(out)

        ref = _reference(x, weight, patch_len=patch_len, stride=stride, d_model=d_model)
        size = patch_len if T == 288 else patch_len // (288 // T)
        step = stride if T == 288 else stride // (288 // T)
        P = (T - size) // step + 1
        assert out.shape == (B, P, N, d_model), out.shape
        assert jnp.allclose(out, ref, atol=1e-4, rtol=1e-4), "mismatch vs reference"

    print("KERNEL_OK")
</pallas_src>

<mosaic_0001>
module attributes {stable_mosaic.version = 11 : i64} {
  func.func @kernel(%arg0: i32, %arg1: memref<1x288x16xf32, #tpu.memory_space<vmem>>, %arg2: memref<12x32xf32, #tpu.memory_space<vmem>>, %arg3: memref<24x32xf32, #tpu.memory_space<vmem>>, %arg4: memref<1x24x16x32xf32, #tpu.memory_space<vmem>>) attributes {dimension_semantics = [#tpu.dimension_semantics<parallel>], iteration_bounds = array<i64: 2>, scalar_prefetch = 0 : i64, scratch_operands = 0 : i64, tpu.core_type = #tpu.core_type<tc>, window_params = [{transform_indices = @transform_0, window_bounds = array<i64: 1, 288, 16>}, {pipeline_mode = #tpu.pipeline_mode<synchronous>, transform_indices = @transform_1, window_bounds = array<i64: 12, 32>}, {pipeline_mode = #tpu.pipeline_mode<synchronous>, transform_indices = @transform_2, window_bounds = array<i64: 24, 32>}, {transform_indices = @transform_3, window_bounds = array<i64: 1, 24, 16, 32>}]} {
    %c0 = arith.constant 0 : index
    %c0_0 = arith.constant 0 : index
    %c0_1 = arith.constant 0 : index
    %0 = vector.load %arg1[%c0, %c0_0, %c0_1] : memref<1x288x16xf32, #tpu.memory_space<vmem>>, vector<1x288x16xf32>
    %1 = vector.shape_cast %0 : vector<1x288x16xf32> to vector<288x16xf32>
    %2 = tpu.transpose %1, [1, 0] : vector<288x16xf32> -> vector<16x288xf32>
    %c0_2 = arith.constant 0 : index
    %c0_3 = arith.constant 0 : index
    %3 = vector.load %arg2[%c0_2, %c0_3] : memref<12x32xf32, #tpu.memory_space<vmem>>, vector<12x32xf32>
    %4 = vector.extract_strided_slice %2 {offsets = [0, 0], sizes = [16, 12], strides = [1, 1]} : vector<16x288xf32> to vector<16x12xf32>
    %5 = vector.extract_strided_slice %2 {offsets = [0, 12], sizes = [16, 12], strides = [1, 1]} : vector<16x288xf32> to vector<16x12xf32>
    %6 = vector.extract_strided_slice %2 {offsets = [0, 24], sizes = [16, 12], strides = [1, 1]} : vector<16x288xf32> to vector<16x12xf32>
    %7 = vector.extract_strided_slice %2 {offsets = [0, 36], sizes = [16, 12], strides = [1, 1]} : vector<16x288xf32> to vector<16x12xf32>
    %8 = vector.extract_strided_slice %2 {offsets = [0, 48], sizes = [16, 12], strides = [1, 1]} : vector<16x288xf32> to vector<16x12xf32>
    %9 = vector.extract_strided_slice %2 {offsets = [0, 60], sizes = [16, 12], strides = [1, 1]} : vector<16x288xf32> to vector<16x12xf32>
    %10 = vector.extract_strided_slice %2 {offsets = [0, 72], sizes = [16, 12], strides = [1, 1]} : vector<16x288xf32> to vector<16x12xf32>
    %11 = vector.extract_strided_slice %2 {offsets = [0, 84], sizes = [16, 12], strides = [1, 1]} : vector<16x288xf32> to vector<16x12xf32>
    %12 = vector.extract_strided_slice %2 {offsets = [0, 96], sizes = [16, 12], strides = [1, 1]} : vector<16x288xf32> to vector<16x12xf32>
    %13 = vector.extract_strided_slice %2 {offsets = [0, 108], sizes = [16, 12], strides = [1, 1]} : vector<16x288xf32> to vector<16x12xf32>
    %14 = vector.extract_strided_slice %2 {offsets = [0, 120], sizes = [16, 12], strides = [1, 1]} : vector<16x288xf32> to vector<16x12xf32>
    %15 = vector.extract_strided_slice %2 {offsets = [0, 132], sizes = [16, 12], strides = [1, 1]} : vector<16x288xf32> to vector<16x12xf32>
    %16 = vector.extract_strided_slice %2 {offsets = [0, 144], sizes = [16, 12], strides = [1, 1]} : vector<16x288xf32> to vector<16x12xf32>
    %17 = vector.extract_strided_slice %2 {offsets = [0, 156], sizes = [16, 12], strides = [1, 1]} : vector<16x288xf32> to vector<16x12xf32>
    %18 = vector.extract_strided_slice %2 {offsets = [0, 168], sizes = [16, 12], strides = [1, 1]} : vector<16x288xf32> to vector<16x12xf32>
    %19 = vector.extract_strided_slice %2 {offsets = [0, 180], sizes = [16, 12], strides = [1, 1]} : vector<16x288xf32> to vector<16x12xf32>
    %20 = vector.extract_strided_slice %2 {offsets = [0, 192], sizes = [16, 12], strides = [1, 1]} : vector<16x288xf32> to vector<16x12xf32>
    %21 = vector.extract_strided_slice %2 {offsets = [0, 204], sizes = [16, 12], strides = [1, 1]} : vector<16x288xf32> to vector<16x12xf32>
    %22 = vector.extract_strided_slice %2 {offsets = [0, 216], sizes = [16, 12], strides = [1, 1]} : vector<16x288xf32> to vector<16x12xf32>
    %23 = vector.extract_strided_slice %2 {offsets = [0, 228], sizes = [16, 12], strides = [1, 1]} : vector<16x288xf32> to vector<16x12xf32>
    %24 = vector.extract_strided_slice %2 {offsets = [0, 240], sizes = [16, 12], strides = [1, 1]} : vector<16x288xf32> to vector<16x12xf32>
    %25 = vector.extract_strided_slice %2 {offsets = [0, 252], sizes = [16, 12], strides = [1, 1]} : vector<16x288xf32> to vector<16x12xf32>
    %26 = vector.extract_strided_slice %2 {offsets = [0, 264], sizes = [16, 12], strides = [1, 1]} : vector<16x288xf32> to vector<16x12xf32>
    %27 = vector.extract_strided_slice %2 {offsets = [0, 276], sizes = [16, 12], strides = [1, 1]} : vector<16x288xf32> to vector<16x12xf32>
    %28 = tpu.concatenate %4, %5, %6, %7, %8, %9, %10, %11, %12, %13, %14, %15, %16, %17, %18, %19 in 0 : vector<16x12xf32>, vector<16x12xf32>, vector<16x12xf32>, vector<16x12xf32>, vector<16x12xf32>, vector<16x12xf32>, vector<16x12xf32>, vector<16x12xf32>, vector<16x12xf32>, vector<16x12xf32>, vector<16x12xf32>, vector<16x12xf32>, vector<16x12xf32>, vector<16x12xf32>, vector<16x12xf32>, vector<16x12xf32> -> vector<256x12xf32>
    %29 = tpu.concatenate %20, %21, %22, %23, %24, %25, %26, %27 in 0 : vector<16x12xf32>, vector<16x12xf32>, vector<16x12xf32>, vector<16x12xf32>, vector<16x12xf32>, vector<16x12xf32>, vector<16x12xf32>, vector<16x12xf32> -> vector<128x12xf32>
    %30 = tpu.concatenate %28, %29 in 0 : vector<256x12xf32>, vector<128x12xf32> -> vector<384x12xf32>
    %cst = arith.constant dense<0.000000e+00> : vector<384x32xf32>
    %31 = tpu.matmul %30, %3, %cst {dimension_numbers = #tpu.dot_dimension_numbers<[1], [0], [0], [1], [0, 0, 1, 1], [], []>, precision = #tpu.contract_precision<fp32>} : vector<384x12xf32>, vector<12x32xf32>, vector<384x32xf32> -> vector<384x32xf32>
    %c0_4 = arith.constant 0 : index
    %c0_5 = arith.constant 0 : index
    %32 = vector.load %arg3[%c0_4, %c0_5] : memref<24x32xf32, #tpu.memory_space<vmem>>, vector<24x32xf32>
    %33 = vector.extract_strided_slice %31 {offsets = [0, 0], sizes = [16, 32], strides = [1, 1]} : vector<384x32xf32> to vector<16x32xf32>
    %34 = vector.extract_strided_slice %32 {offsets = [0, 0], sizes = [1, 32], strides = [1, 1]} : vector<24x32xf32> to vector<1x32xf32>
    %35 = vector.broadcast %34 : vector<1x32xf32> to vector<16x32xf32>
    %36 = arith.addf %33, %35 : vector<16x32xf32>
    %c0_6 = arith.constant 0 : index
    %c0_7 = arith.constant 0 : index
    %c0_8 = arith.constant 0 : index
    %c0_9 = arith.constant 0 : index
    %37 = vector.load %arg4[%c0_6, %c0_7, %c0_8, %c0_9] : memref<1x24x16x32xf32, #tpu.memory_space<vmem>>, vector<1x1x16x32xf32>
    %38 = vector.shape_cast %37 : vector<1x1x16x32xf32> to vector<16x32xf32>
    %39 = vector.shape_cast %36 : vector<16x32xf32> to vector<1x1x16x32xf32>
    tpu.vector_store %arg4[%c0_6, %c0_7, %c0_8, %c0_9], %39 {strides = array<i32>} : memref<1x24x16x32xf32, #tpu.memory_space<vmem>>, vector<1x1x16x32xf32>,
    %40 = vector.extract_strided_slice %31 {offsets = [16, 0], sizes = [16, 32], strides = [1, 1]} : vector<384x32xf32> to vector<16x32xf32>
    %41 = vector.extract_strided_slice %32 {offsets = [1, 0], sizes = [1, 32], strides = [1, 1]} : vector<24x32xf32> to vector<1x32xf32>
    %42 = vector.broadcast %41 : vector<1x32xf32> to vector<16x32xf32>
    %43 = arith.addf %40, %42 : vector<16x32xf32>
    %c0_10 = arith.constant 0 : index
    %c1 = arith.constant 1 : index
    %c0_11 = arith.constant 0 : index
    %c0_12 = arith.constant 0 : index
    %44 = vector.load %arg4[%c0_10, %c1, %c0_11, %c0_12] : memref<1x24x16x32xf32, #tpu.memory_space<vmem>>, vector<1x1x16x32xf32>
    %45 = vector.shape_cast %44 : vector<1x1x16x32xf32> to vector<16x32xf32>
    %46 = vector.shape_cast %43 : vector<16x32xf32> to vector<1x1x16x32xf32>
    tpu.vector_store %arg4[%c0_10, %c1, %c0_11, %c0_12], %46 {strides = array<i32>} : memref<1x24x16x32xf32, #tpu.memory_space<vmem>>, vector<1x1x16x32xf32>,
    %47 = vector.extract_strided_slice %31 {offsets = [32, 0], sizes = [16, 32], strides = [1, 1]} : vector<384x32xf32> to vector<16x32xf32>
    %48 = vector.extract_strided_slice %32 {offsets = [2, 0], sizes = [1, 32], strides = [1, 1]} : vector<24x32xf32> to vector<1x32xf32>
    %49 = vector.broadcast %48 : vector<1x32xf32> to vector<16x32xf32>
    %50 = arith.addf %47, %49 : vector<16x32xf32>
    %c0_13 = arith.constant 0 : index
    %c2 = arith.constant 2 : index
    %c0_14 = arith.constant 0 : index
    %c0_15 = arith.constant 0 : index
    %51 = vector.load %arg4[%c0_13, %c2, %c0_14, %c0_15] : memref<1x24x16x32xf32, #tpu.memory_space<vmem>>, vector<1x1x16x32xf32>
    %52 = vector.shape_cast %51 : vector<1x1x16x32xf32> to vector<16x32xf32>
    %53 = vector.shape_cast %50 : vector<16x32xf32> to vector<1x1x16x32xf32>
    tpu.vector_store %arg4[%c0_13, %c2, %c0_14, %c0_15], %53 {strides = array<i32>} : memref<1x24x16x32xf32, #tpu.memory_space<vmem>>, vector<1x1x16x32xf32>,
    %54 = vector.extract_strided_slice %31 {offsets = [48, 0], sizes = [16, 32], strides = [1, 1]} : vector<384x32xf32> to vector<16x32xf32>
    %55 = vector.extract_strided_slice %32 {offsets = [3, 0], sizes = [1, 32], strides = [1, 1]} : vector<24x32xf32> to vector<1x32xf32>
    %56 = vector.broadcast %55 : vector<1x32xf32> to vector<16x32xf32>
    %57 = arith.addf %54, %56 : vector<16x32xf32>
    %c0_16 = arith.constant 0 : index
    %c3 = arith.constant 3 : index
    %c0_17 = arith.constant 0 : index
    %c0_18 = arith.constant 0 : index
    %58 = vector.load %arg4[%c0_16, %c3, %c0_17, %c0_18] : memref<1x24x16x32xf32, #tpu.memory_space<vmem>>, vector<1x1x16x32xf32>
    %59 = vector.shape_cast %58 : vector<1x1x16x32xf32> to vector<16x32xf32>
    %60 = vector.shape_cast %57 : vector<16x32xf32> to vector<1x1x16x32xf32>
    tpu.vector_store %arg4[%c0_16, %c3, %c0_17, %c0_18], %60 {strides = array<i32>} : memref<1x24x16x32xf32, #tpu.memory_space<vmem>>, vector<1x1x16x32xf32>,
    %61 = vector.extract_strided_slice %31 {offsets = [64, 0], sizes = [16, 32], strides = [1, 1]} : vector<384x32xf32> to vector<16x32xf32>
    %62 = vector.extract_strided_slice %32 {offsets = [4, 0], sizes = [1, 32], strides = [1, 1]} : vector<24x32xf32> to vector<1x32xf32>
    %63 = vector.broadcast %62 : vector<1x32xf32> to vector<16x32xf32>
    %64 = arith.addf %61, %63 : vector<16x32xf32>
    %c0_19 = arith.constant 0 : index
    %c4 = arith.constant 4 : index
    %c0_20 = arith.constant 0 : index
    %c0_21 = arith.constant 0 : index
    %65 = vector.load %arg4[%c0_19, %c4, %c0_20, %c0_21] : memref<1x24x16x32xf32, #tpu.memory_space<vmem>>, vector<1x1x16x32xf32>
    %66 = vector.shape_cast %65 : vector<1x1x16x32xf32> to vector<16x32xf32>
    %67 = vector.shape_cast %64 : vector<16x32xf32> to vector<1x1x16x32xf32>
    tpu.vector_store %arg4[%c0_19, %c4, %c0_20, %c0_21], %67 {strides = array<i32>} : memref<1x24x16x32xf32, #tpu.memory_space<vmem>>, vector<1x1x16x32xf32>,
    %68 = vector.extract_strided_slice %31 {offsets = [80, 0], sizes = [16, 32], strides = [1, 1]} : vector<384x32xf32> to vector<16x32xf32>
    %69 = vector.extract_strided_slice %32 {offsets = [5, 0], sizes = [1, 32], strides = [1, 1]} : vector<24x32xf32> to vector<1x32xf32>
    %70 = vector.broadcast %69 : vector<1x32xf32> to vector<16x32xf32>
    %71 = arith.addf %68, %70 : vector<16x32xf32>
    %c0_22 = arith.constant 0 : index
    %c5 = arith.constant 5 : index
    %c0_23 = arith.constant 0 : index
    %c0_24 = arith.constant 0 : index
    %72 = vector.load %arg4[%c0_22, %c5, %c0_23, %c0_24] : memref<1x24x16x32xf32, #tpu.memory_space<vmem>>, vector<1x1x16x32xf32>
    %73 = vector.shape_cast %72 : vector<1x1x16x32xf32> to vector<16x32xf32>
    %74 = vector.shape_cast %71 : vector<16x32xf32> to vector<1x1x16x32xf32>
    tpu.vector_store %arg4[%c0_22, %c5, %c0_23, %c0_24], %74 {strides = array<i32>} : memref<1x24x16x32xf32, #tpu.memory_space<vmem>>, vector<1x1x16x32xf32>,
    %75 = vector.extract_strided_slice %31 {offsets = [96, 0], sizes = [16, 32], strides = [1, 1]} : vector<384x32xf32> to vector<16x32xf32>
    %76 = vector.extract_strided_slice %32 {offsets = [6, 0], sizes = [1, 32], strides = [1, 1]} : vector<24x32xf32> to vector<1x32xf32>
    %77 = vector.broadcast %76 : vector<1x32xf32> to vector<16x32xf32>
    %78 = arith.addf %75, %77 : vector<16x32xf32>
    %c0_25 = arith.constant 0 : index
    %c6 = arith.constant 6 : index
    %c0_26 = arith.constant 0 : index
    %c0_27 = arith.constant 0 : index
    %79 = vector.load %arg4[%c0_25, %c6, %c0_26, %c0_27] : memref<1x24x16x32xf32, #tpu.memory_space<vmem>>, vector<1x1x16x32xf32>
    %80 = vector.shape_cast %79 : vector<1x1x16x32xf32> to vector<16x32xf32>
    %81 = vector.shape_cast %78 : vector<16x32xf32> to vector<1x1x16x32xf32>
    tpu.vector_store %arg4[%c0_25, %c6, %c0_26, %c0_27], %81 {strides = array<i32>} : memref<1x24x16x32xf32, #tpu.memory_space<vmem>>, vector<1x1x16x32xf32>,
    %82 = vector.extract_strided_slice %31 {offsets = [112, 0], sizes = [16, 32], strides = [1, 1]} : vector<384x32xf32> to vector<16x32xf32>
    %83 = vector.extract_strided_slice %32 {offsets = [7, 0], sizes = [1, 32], strides = [1, 1]} : vector<24x32xf32> to vector<1x32xf32>
    %84 = vector.broadcast %83 : vector<1x32xf32> to vector<16x32xf32>
    %85 = arith.addf %82, %84 : vector<16x32xf32>
    %c0_28 = arith.constant 0 : index
    %c7 = arith.constant 7 : index
    %c0_29 = arith.constant 0 : index
    %c0_30 = arith.constant 0 : index
    %86 = vector.load %arg4[%c0_28, %c7, %c0_29, %c0_30] : memref<1x24x16x32xf32, #tpu.memory_space<vmem>>, vector<1x1x16x32xf32>
    %87 = vector.shape_cast %86 : vector<1x1x16x32xf32> to vector<16x32xf32>
    %88 = vector.shape_cast %85 : vector<16x32xf32> to vector<1x1x16x32xf32>
    tpu.vector_store %arg4[%c0_28, %c7, %c0_29, %c0_30], %88 {strides = array<i32>} : memref<1x24x16x32xf32, #tpu.memory_space<vmem>>, vector<1x1x16x32xf32>,
    %89 = vector.extract_strided_slice %31 {offsets = [128, 0], sizes = [16, 32], strides = [1, 1]} : vector<384x32xf32> to vector<16x32xf32>
    %90 = vector.extract_strided_slice %32 {offsets = [8, 0], sizes = [1, 32], strides = [1, 1]} : vector<24x32xf32> to vector<1x32xf32>
    %91 = vector.broadcast %90 : vector<1x32xf32> to vector<16x32xf32>
    %92 = arith.addf %89, %91 : vector<16x32xf32>
    %c0_31 = arith.constant 0 : index
    %c8 = arith.constant 8 : index
    %c0_32 = arith.constant 0 : index
    %c0_33 = arith.constant 0 : index
    %93 = vector.load %arg4[%c0_31, %c8, %c0_32, %c0_33] : memref<1x24x16x32xf32, #tpu.memory_space<vmem>>, vector<1x1x16x32xf32>
    %94 = vector.shape_cast %93 : vector<1x1x16x32xf32> to vector<16x32xf32>
    %95 = vector.shape_cast %92 : vector<16x32xf32> to vector<1x1x16x32xf32>
    tpu.vector_store %arg4[%c0_31, %c8, %c0_32, %c0_33], %95 {strides = array<i32>} : memref<1x24x16x32xf32, #tpu.memory_space<vmem>>, vector<1x1x16x32xf32>,
    %96 = vector.extract_strided_slice %31 {offsets = [144, 0], sizes = [16, 32], strides = [1, 1]} : vector<384x32xf32> to vector<16x32xf32>
    %97 = vector.extract_strided_slice %32 {offsets = [9, 0], sizes = [1, 32], strides = [1, 1]} : vector<24x32xf32> to vector<1x32xf32>
    %98 = vector.broadcast %97 : vector<1x32xf32> to vector<16x32xf32>
    %99 = arith.addf %96, %98 : vector<16x32xf32>
    %c0_34 = arith.constant 0 : index
    %c9 = arith.constant 9 : index
    %c0_35 = arith.constant 0 : index
    %c0_36 = arith.constant 0 : index
    %100 = vector.load %arg4[%c0_34, %c9, %c0_35, %c0_36] : memref<1x24x16x32xf32, #tpu.memory_space<vmem>>, vector<1x1x16x32xf32>
    %101 = vector.shape_cast %100 : vector<1x1x16x32xf32> to vector<16x32xf32>
    %102 = vector.shape_cast %99 : vector<16x32xf32> to vector<1x1x16x32xf32>
    tpu.vector_store %arg4[%c0_34, %c9, %c0_35, %c0_36], %102 {strides = array<i32>} : memref<1x24x16x32xf32, #tpu.memory_space<vmem>>, vector<1x1x16x32xf32>,
    %103 = vector.extract_strided_slice %31 {offsets = [160, 0], sizes = [16, 32], strides = [1, 1]} : vector<384x32xf32> to vector<16x32xf32>
    %104 = vector.extract_strided_slice %32 {offsets = [10, 0], sizes = [1, 32], strides = [1, 1]} : vector<24x32xf32> to vector<1x32xf32>
    %105 = vector.broadcast %104 : vector<1x32xf32> to vector<16x32xf32>
    %106 = arith.addf %103, %105 : vector<16x32xf32>
    %c0_37 = arith.constant 0 : index
    %c10 = arith.constant 10 : index
    %c0_38 = arith.constant 0 : index
    %c0_39 = arith.constant 0 : index
    %107 = vector.load %arg4[%c0_37, %c10, %c0_38, %c0_39] : memref<1x24x16x32xf32, #tpu.memory_space<vmem>>, vector<1x1x16x32xf32>
    %108 = vector.shape_cast %107 : vector<1x1x16x32xf32> to vector<16x32xf32>
    %109 = vector.shape_cast %106 : vector<16x32xf32> to vector<1x1x16x32xf32>
    tpu.vector_store %arg4[%c0_37, %c10, %c0_38, %c0_39], %109 {strides = array<i32>} : memref<1x24x16x32xf32, #tpu.memory_space<vmem>>, vector<1x1x16x32xf32>,
    %110 = vector.extract_strided_slice %31 {offsets = [176, 0], sizes = [16, 32], strides = [1, 1]} : vector<384x32xf32> to vector<16x32xf32>
    %111 = vector.extract_strided_slice %32 {offsets = [11, 0], sizes = [1, 32], strides = [1, 1]} : vector<24x32xf32> to vector<1x32xf32>
    %112 = vector.broadcast %111 : vector<1x32xf32> to vector<16x32xf32>
    %113 = arith.addf %110, %112 : vector<16x32xf32>
    %c0_40 = arith.constant 0 : index
    %c11 = arith.constant 11 : index
    %c0_41 = arith.constant 0 : index
    %c0_42 = arith.constant 0 : index
    %114 = vector.load %arg4[%c0_40, %c11, %c0_41, %c0_42] : memref<1x24x16x32xf32, #tpu.memory_space<vmem>>, vector<1x1x16x32xf32>
    %115 = vector.shape_cast %114 : vector<1x1x16x32xf32> to vector<16x32xf32>
    %116 = vector.shape_cast %113 : vector<16x32xf32> to vector<1x1x16x32xf32>
    tpu.vector_store %arg4[%c0_40, %c11, %c0_41, %c0_42], %116 {strides = array<i32>} : memref<1x24x16x32xf32, #tpu.memory_space<vmem>>, vector<1x1x16x32xf32>,
    %117 = vector.extract_strided_slice %31 {offsets = [192, 0], sizes = [16, 32], strides = [1, 1]} : vector<384x32xf32> to vector<16x32xf32>
    %118 = vector.extract_strided_slice %32 {offsets = [12, 0], sizes = [1, 32], strides = [1, 1]} : vector<24x32xf32> to vector<1x32xf32>
    %119 = vector.broadcast %118 : vector<1x32xf32> to vector<16x32xf32>
    %120 = arith.addf %117, %119 : vector<16x32xf32>
    %c0_43 = arith.constant 0 : index
    %c12 = arith.constant 12 : index
    %c0_44 = arith.constant 0 : index
    %c0_45 = arith.constant 0 : index
    %121 = vector.load %arg4[%c0_43, %c12, %c0_44, %c0_45] : memref<1x24x16x32xf32, #tpu.memory_space<vmem>>, vector<1x1x16x32xf32>
    %122 = vector.shape_cast %121 : vector<1x1x16x32xf32> to vector<16x32xf32>
    %123 = vector.shape_cast %120 : vector<16x32xf32> to vector<1x1x16x32xf32>
    tpu.vector_store %arg4[%c0_43, %c12, %c0_44, %c0_45], %123 {strides = array<i32>} : memref<1x24x16x32xf32, #tpu.memory_space<vmem>>, vector<1x1x16x32xf32>,
    %124 = vector.extract_strided_slice %31 {offsets = [208, 0], sizes = [16, 32], strides = [1, 1]} : vector<384x32xf32> to vector<16x32xf32>
    %125 = vector.extract_strided_slice %32 {offsets = [13, 0], sizes = [1, 32], strides = [1, 1]} : vector<24x32xf32> to vector<1x32xf32>
    %126 = vector.broadcast %125 : vector<1x32xf32> to vector<16x32xf32>
    %127 = arith.addf %124, %126 : vector<16x32xf32>
    %c0_46 = arith.constant 0 : index
    %c13 = arith.constant 13 : index
    %c0_47 = arith.constant 0 : index
    %c0_48 = arith.constant 0 : index
    %128 = vector.load %arg4[%c0_46, %c13, %c0_47, %c0_48] : memref<1x24x16x32xf32, #tpu.memory_space<vmem>>, vector<1x1x16x32xf32>
    %129 = vector.shape_cast %128 : vector<1x1x16x32xf32> to vector<16x32xf32>
    %130 = vector.shape_cast %127 : vector<16x32xf32> to vector<1x1x16x32xf32>
    tpu.vector_store %arg4[%c0_46, %c13, %c0_47, %c0_48], %130 {strides = array<i32>} : memref<1x24x16x32xf32, #tpu.memory_space<vmem>>, vector<1x1x16x32xf32>,
    %131 = vector.extract_strided_slice %31 {offsets = [224, 0], sizes = [16, 32], strides = [1, 1]} : vector<384x32xf32> to vector<16x32xf32>
    %132 = vector.extract_strided_slice %32 {offsets = [14, 0], sizes = [1, 32], strides = [1, 1]} : vector<24x32xf32> to vector<1x32xf32>
    %133 = vector.broadcast %132 : vector<1x32xf32> to vector<16x32xf32>
    %134 = arith.addf %131, %133 : vector<16x32xf32>
    %c0_49 = arith.constant 0 : index
    %c14 = arith.constant 14 : index
    %c0_50 = arith.constant 0 : index
    %c0_51 = arith.constant 0 : index
    %135 = vector.load %arg4[%c0_49, %c14, %c0_50, %c0_51] : memref<1x24x16x32xf32, #tpu.memory_space<vmem>>, vector<1x1x16x32xf32>
    %136 = vector.shape_cast %135 : vector<1x1x16x32xf32> to vector<16x32xf32>
    %137 = vector.shape_cast %134 : vector<16x32xf32> to vector<1x1x16x32xf32>
    tpu.vector_store %arg4[%c0_49, %c14, %c0_50, %c0_51], %137 {strides = array<i32>} : memref<1x24x16x32xf32, #tpu.memory_space<vmem>>, vector<1x1x16x32xf32>,
    %138 = vector.extract_strided_slice %31 {offsets = [240, 0], sizes = [16, 32], strides = [1, 1]} : vector<384x32xf32> to vector<16x32xf32>
    %139 = vector.extract_strided_slice %32 {offsets = [15, 0], sizes = [1, 32], strides = [1, 1]} : vector<24x32xf32> to vector<1x32xf32>
    %140 = vector.broadcast %139 : vector<1x32xf32> to vector<16x32xf32>
    %141 = arith.addf %138, %140 : vector<16x32xf32>
    %c0_52 = arith.constant 0 : index
    %c15 = arith.constant 15 : index
    %c0_53 = arith.constant 0 : index
    %c0_54 = arith.constant 0 : index
    %142 = vector.load %arg4[%c0_52, %c15, %c0_53, %c0_54] : memref<1x24x16x32xf32, #tpu.memory_space<vmem>>, vector<1x1x16x32xf32>
    %143 = vector.shape_cast %142 : vector<1x1x16x32xf32> to vector<16x32xf32>
    %144 = vector.shape_cast %141 : vector<16x32xf32> to vector<1x1x16x32xf32>
    tpu.vector_store %arg4[%c0_52, %c15, %c0_53, %c0_54], %144 {strides = array<i32>} : memref<1x24x16x32xf32, #tpu.memory_space<vmem>>, vector<1x1x16x32xf32>,
    %145 = vector.extract_strided_slice %31 {offsets = [256, 0], sizes = [16, 32], strides = [1, 1]} : vector<384x32xf32> to vector<16x32xf32>
    %146 = vector.extract_strided_slice %32 {offsets = [16, 0], sizes = [1, 32], strides = [1, 1]} : vector<24x32xf32> to vector<1x32xf32>
    %147 = vector.broadcast %146 : vector<1x32xf32> to vector<16x32xf32>
    %148 = arith.addf %145, %147 : vector<16x32xf32>
    %c0_55 = arith.constant 0 : index
    %c16 = arith.constant 16 : index
    %c0_56 = arith.constant 0 : index
    %c0_57 = arith.constant 0 : index
    %149 = vector.load %arg4[%c0_55, %c16, %c0_56, %c0_57] : memref<1x24x16x32xf32, #tpu.memory_space<vmem>>, vector<1x1x16x32xf32>
    %150 = vector.shape_cast %149 : vector<1x1x16x32xf32> to vector<16x32xf32>
    %151 = vector.shape_cast %148 : vector<16x32xf32> to vector<1x1x16x32xf32>
    tpu.vector_store %arg4[%c0_55, %c16, %c0_56, %c0_57], %151 {strides = array<i32>} : memref<1x24x16x32xf32, #tpu.memory_space<vmem>>, vector<1x1x16x32xf32>,
    %152 = vector.extract_strided_slice %31 {offsets = [272, 0], sizes = [16, 32], strides = [1, 1]} : vector<384x32xf32> to vector<16x32xf32>
    %153 = vector.extract_strided_slice %32 {offsets = [17, 0], sizes = [1, 32], strides = [1, 1]} : vector<24x32xf32> to vector<1x32xf32>
    %154 = vector.broadcast %153 : vector<1x32xf32> to vector<16x32xf32>
    %155 = arith.addf %152, %154 : vector<16x32xf32>
    %c0_58 = arith.constant 0 : index
    %c17 = arith.constant 17 : index
    %c0_59 = arith.constant 0 : index
    %c0_60 = arith.constant 0 : index
    %156 = vector.load %arg4[%c0_58, %c17, %c0_59, %c0_60] : memref<1x24x16x32xf32, #tpu.memory_space<vmem>>, vector<1x1x16x32xf32>
    %157 = vector.shape_cast %156 : vector<1x1x16x32xf32> to vector<16x32xf32>
    %158 = vector.shape_cast %155 : vector<16x32xf32> to vector<1x1x16x32xf32>
    tpu.vector_store %arg4[%c0_58, %c17, %c0_59, %c0_60], %158 {strides = array<i32>} : memref<1x24x16x32xf32, #tpu.memory_space<vmem>>, vector<1x1x16x32xf32>,
    %159 = vector.extract_strided_slice %31 {offsets = [288, 0], sizes = [16, 32], strides = [1, 1]} : vector<384x32xf32> to vector<16x32xf32>
    %160 = vector.extract_strided_slice %32 {offsets = [18, 0], sizes = [1, 32], strides = [1, 1]} : vector<24x32xf32> to vector<1x32xf32>
    %161 = vector.broadcast %160 : vector<1x32xf32> to vector<16x32xf32>
    %162 = arith.addf %159, %161 : vector<16x32xf32>
    %c0_61 = arith.constant 0 : index
    %c18 = arith.constant 18 : index
    %c0_62 = arith.constant 0 : index
    %c0_63 = arith.constant 0 : index
    %163 = vector.load %arg4[%c0_61, %c18, %c0_62, %c0_63] : memref<1x24x16x32xf32, #tpu.memory_space<vmem>>, vector<1x1x16x32xf32>
    %164 = vector.shape_cast %163 : vector<1x1x16x32xf32> to vector<16x32xf32>
    %165 = vector.shape_cast %162 : vector<16x32xf32> to vector<1x1x16x32xf32>
    tpu.vector_store %arg4[%c0_61, %c18, %c0_62, %c0_63], %165 {strides = array<i32>} : memref<1x24x16x32xf32, #tpu.memory_space<vmem>>, vector<1x1x16x32xf32>,
    %166 = vector.extract_strided_slice %31 {offsets = [304, 0], sizes = [16, 32], strides = [1, 1]} : vector<384x32xf32> to vector<16x32xf32>
    %167 = vector.extract_strided_slice %32 {offsets = [19, 0], sizes = [1, 32], strides = [1, 1]} : vector<24x32xf32> to vector<1x32xf32>
    %168 = vector.broadcast %167 : vector<1x32xf32> to vector<16x32xf32>
    %169 = arith.addf %166, %168 : vector<16x32xf32>
    %c0_64 = arith.constant 0 : index
    %c19 = arith.constant 19 : index
    %c0_65 = arith.constant 0 : index
    %c0_66 = arith.constant 0 : index
    %170 = vector.load %arg4[%c0_64, %c19, %c0_65, %c0_66] : memref<1x24x16x32xf32, #tpu.memory_space<vmem>>, vector<1x1x16x32xf32>
    %171 = vector.shape_cast %170 : vector<1x1x16x32xf32> to vector<16x32xf32>
    %172 = vector.shape_cast %169 : vector<16x32xf32> to vector<1x1x16x32xf32>
    tpu.vector_store %arg4[%c0_64, %c19, %c0_65, %c0_66], %172 {strides = array<i32>} : memref<1x24x16x32xf32, #tpu.memory_space<vmem>>, vector<1x1x16x32xf32>,
    %173 = vector.extract_strided_slice %31 {offsets = [320, 0], sizes = [16, 32], strides = [1, 1]} : vector<384x32xf32> to vector<16x32xf32>
    %174 = vector.extract_strided_slice %32 {offsets = [20, 0], sizes = [1, 32], strides = [1, 1]} : vector<24x32xf32> to vector<1x32xf32>
    %175 = vector.broadcast %174 : vector<1x32xf32> to vector<16x32xf32>
    %176 = arith.addf %173, %175 : vector<16x32xf32>
    %c0_67 = arith.constant 0 : index
    %c20 = arith.constant 20 : index
    %c0_68 = arith.constant 0 : index
    %c0_69 = arith.constant 0 : index
    %177 = vector.load %arg4[%c0_67, %c20, %c0_68, %c0_69] : memref<1x24x16x32xf32, #tpu.memory_space<vmem>>, vector<1x1x16x32xf32>
    %178 = vector.shape_cast %177 : vector<1x1x16x32xf32> to vector<16x32xf32>
    %179 = vector.shape_cast %176 : vector<16x32xf32> to vector<1x1x16x32xf32>
    tpu.vector_store %arg4[%c0_67, %c20, %c0_68, %c0_69], %179 {strides = array<i32>} : memref<1x24x16x32xf32, #tpu.memory_space<vmem>>, vector<1x1x16x32xf32>,
    %180 = vector.extract_strided_slice %31 {offsets = [336, 0], sizes = [16, 32], strides = [1, 1]} : vector<384x32xf32> to vector<16x32xf32>
    %181 = vector.extract_strided_slice %32 {offsets = [21, 0], sizes = [1, 32], strides = [1, 1]} : vector<24x32xf32> to vector<1x32xf32>
    %182 = vector.broadcast %181 : vector<1x32xf32> to vector<16x32xf32>
    %183 = arith.addf %180, %182 : vector<16x32xf32>
    %c0_70 = arith.constant 0 : index
    %c21 = arith.constant 21 : index
    %c0_71 = arith.constant 0 : index
    %c0_72 = arith.constant 0 : index
    %184 = vector.load %arg4[%c0_70, %c21, %c0_71, %c0_72] : memref<1x24x16x32xf32, #tpu.memory_space<vmem>>, vector<1x1x16x32xf32>
    %185 = vector.shape_cast %184 : vector<1x1x16x32xf32> to vector<16x32xf32>
    %186 = vector.shape_cast %183 : vector<16x32xf32> to vector<1x1x16x32xf32>
    tpu.vector_store %arg4[%c0_70, %c21, %c0_71, %c0_72], %186 {strides = array<i32>} : memref<1x24x16x32xf32, #tpu.memory_space<vmem>>, vector<1x1x16x32xf32>,
    %187 = vector.extract_strided_slice %31 {offsets = [352, 0], sizes = [16, 32], strides = [1, 1]} : vector<384x32xf32> to vector<16x32xf32>
    %188 = vector.extract_strided_slice %32 {offsets = [22, 0], sizes = [1, 32], strides = [1, 1]} : vector<24x32xf32> to vector<1x32xf32>
    %189 = vector.broadcast %188 : vector<1x32xf32> to vector<16x32xf32>
    %190 = arith.addf %187, %189 : vector<16x32xf32>
    %c0_73 = arith.constant 0 : index
    %c22 = arith.constant 22 : index
    %c0_74 = arith.constant 0 : index
    %c0_75 = arith.constant 0 : index
    %191 = vector.load %arg4[%c0_73, %c22, %c0_74, %c0_75] : memref<1x24x16x32xf32, #tpu.memory_space<vmem>>, vector<1x1x16x32xf32>
    %192 = vector.shape_cast %191 : vector<1x1x16x32xf32> to vector<16x32xf32>
    %193 = vector.shape_cast %190 : vector<16x32xf32> to vector<1x1x16x32xf32>
    tpu.vector_store %arg4[%c0_73, %c22, %c0_74, %c0_75], %193 {strides = array<i32>} : memref<1x24x16x32xf32, #tpu.memory_space<vmem>>, vector<1x1x16x32xf32>,
    %194 = vector.extract_strided_slice %31 {offsets = [368, 0], sizes = [16, 32], strides = [1, 1]} : vector<384x32xf32> to vector<16x32xf32>
    %195 = vector.extract_strided_slice %32 {offsets = [23, 0], sizes = [1, 32], strides = [1, 1]} : vector<24x32xf32> to vector<1x32xf32>
    %196 = vector.broadcast %195 : vector<1x32xf32> to vector<16x32xf32>
    %197 = arith.addf %194, %196 : vector<16x32xf32>
    %c0_76 = arith.constant 0 : index
    %c23 = arith.constant 23 : index
    %c0_77 = arith.constant 0 : index
    %c0_78 = arith.constant 0 : index
    %198 = vector.load %arg4[%c0_76, %c23, %c0_77, %c0_78] : memref<1x24x16x32xf32, #tpu.memory_space<vmem>>, vector<1x1x16x32xf32>
    %199 = vector.shape_cast %198 : vector<1x1x16x32xf32> to vector<16x32xf32>
    %200 = vector.shape_cast %197 : vector<16x32xf32> to vector<1x1x16x32xf32>
    tpu.vector_store %arg4[%c0_76, %c23, %c0_77, %c0_78], %200 {strides = array<i32>} : memref<1x24x16x32xf32, #tpu.memory_space<vmem>>, vector<1x1x16x32xf32>,
    return
  }
  func.func @transform_0(%arg0: i32) -> (i32, i32, i32) {
    %c0_i32 = arith.constant 0 : i32
    %c0_i32_0 = arith.constant 0 : i32
    %c0_i32_1 = arith.constant 0 : i32
    return %arg0, %c0_i32, %c0_i32_0 : i32, i32, i32
  }
  func.func @transform_1(%arg0: i32) -> (i32, i32) {
    %c0_i32 = arith.constant 0 : i32
    %c0_i32_0 = arith.constant 0 : i32
    %c0_i32_1 = arith.constant 0 : i32
    return %c0_i32, %c0_i32_0 : i32, i32
  }
  func.func @transform_2(%arg0: i32) -> (i32, i32) {
    %c0_i32 = arith.constant 0 : i32
    %c0_i32_0 = arith.constant 0 : i32
    %c0_i32_1 = arith.constant 0 : i32
    return %c0_i32, %c0_i32_0 : i32, i32
  }
  func.func @transform_3(%arg0: i32) -> (i32, i32, i32, i32) {
    %c0_i32 = arith.constant 0 : i32
    %c0_i32_0 = arith.constant 0 : i32
    %c0_i32_1 = arith.constant 0 : i32
    %c0_i32_2 = arith.constant 0 : i32
    return %arg0, %c0_i32, %c0_i32_0, %c0_i32_1 : i32, i32, i32, i32
  }
}

</mosaic_0001>

<bundles_post_ra>
// kernel: tpu_custom_call.1
= control target key start
LH: loop header
LB: loop body
LE: loop exit
PB: predicated region body
PF: predicated region fallthrough
CT: control target
= control target key end

     0   :  { %8 = vsyncpa [#allocation3], 0  ;;  %s5569_s0 = inlined_call_operand.vmem [shape: f32[2,288,16], index: 0, kind: input, shape index: {}]   ;;  %s5570_s1 = inlined_call_operand.vmem [shape: f32[12,32], index: 1, kind: input, shape index: {}]   ;;  %s5571_s2 = inlined_call_operand.vmem [shape: f32[24,32], index: 2, kind: input, shape index: {}]   ;;  %s5572_s3 = inlined_call_operand.hbm [shape: f32[2,24,16,32], index: 3, kind: output, shape index: {}]  }
   0x1   :  { %10 = vsyncpa [#allocation3 + $0x1], 0  ;;  %s4555_s12 = smov 0   ;;  %s4557_s13 = smov 0  }
   0x2   :  { %s4559_s14 = smov 0   ;;  %s4561_s15 = smov 0  }
   0x3 LB: > { %s4576_s16 = sadd.s32 4294967295, %s4515_s15   ;;  %s3319_s17 = sadd.s32 4294967294, %s4515_s15   ;;  %s4515_s15 = sphi %s4561_s15, %s5710_s15   ;;  %s4511_s14 = sphi %s4559_s14, %s5709_s14   ;;  %s4507_s13 = sphi %s4557_s13, %s5708_s13   ;;  %s4503_s12 = sphi %s4555_s12, %s5707_s12  }
   0x4   : > { %s4580_s18 = sadd.s32 1, %s4515_s15   ;;  %s91_s19 = sadd.s32 1, %s4511_s14 }
   0x5   : > { %s88_s20 = ssub.s32 %s4515_s15, %s4580_s18  ;;  %p101_p0 = scmp.ne.s32.totalorder %s4511_s14, %s4507_s13 }
   0x6   : > { %p89_p1 = scmp.eq.s32.totalorder %s88_s20, 0  ;;  %p102_p2 = scmp.eq.s32.totalorder %s4576_s16, 1 }
   0x7   : > { %p107_p3 = scmp.ne.s32.totalorder %s4507_s13, %s4503_s12  ;;  %p108_p4 = scmp.eq.s32.totalorder %s3319_s17, 1 }
   0x8   : > { %s4591_s21 = scalar_select %p89_p1, %s4511_s14, %s91_s19  }
   0x9   : > { %p4593_p5 = por %p102_p2, %p101_p0  ;;  %p4597_p6 = por %p108_p4, %p107_p3 }
   0xa   : > { %p3322_p7 = scmp.ge.s32.totalorder %s4515_s15, 1  ;;  %p140_p8 = scmp.lt.s32.totalorder %s4515_s15, 3 }
   0xc   : > { %p141_p9 = pnand %p3322_p7, %p140_p8 }
   0xe   : > { %144 = sbr.rel (%p141_p9) target bundleno = 907 (0x38b), region = 32 }
  0x15   : > { %p164_p10 = scmp.lt.s32.totalorder %s4576_s16, 1  ;;  %v302_v18 = vld [vmem:[%s5570_s1 + $0x8] sm:$0xf]  ;;  %vm540_vm0 = vcmask 1043456   ;;  %v4636_v21 = vld [vmem:[%s5570_s1] sm:$0xff]  ;;  %vm443_vm1 = vcmask 97280  }
  0x16   : > { %v4638_v22 = vsel %vm540_vm0, %v302_v18, 0  ;;  %v545_v23 = vand.u32 4294901760, %v4636_v21  ;;  %s4517_s6 = smov 116   ;;  %s4518_s7 = smov 104   ;;  %vm400_vm2 = vcmask 556032   ;;  %vm351_vm3 = vcmask 64512  }
  0x17   : > { %s165_s24 = scalar_select %p164_p10, %s4576_s16, 1  ;;  %v548_v24 = vand.u32 4294901760, %v4638_v22  ;;  %vm3033_vm4 = vcmask 261120  }
  0x18   : > { %s4519_s8 = smov 92   ;;  %s4520_s9 = smov 80   ;;  %v4722_v60 = vsub.f32 %v4636_v21, %v545_v23 }
  0x19   : > { %s4394_s25 = smul.u32 288, %s165_s24  ;;  %v4646_v25 = vpack.c.bf16 %v548_v24, %v545_v23  ;;  %s4521_s10 = smov 68   ;;  %v4727_v61 = vsub.f32 %v4638_v22, %v548_v24 }
  0x1a   : > { %s4522_s11 = smov 56   ;;  %s4523_s17 = smov 44   ;;  %v1094_v62 = vand.u32 4294901760, %v4722_v60 }
  0x1b   : > { %s4608_s28 = scalar_lea.vmem %s5569_s0, %s4394_s25  ;;  %4142 = vmatprep.subr.bf16.mxu0 %v4646_v25  ;;  %4130 = vmatprep.subr.bf16.mxu1 %v4646_v25  ;;  %s4524_s19 = smov 32   ;;  %v1101_v63 = vand.u32 4294901760, %v4727_v61 }
  0x1c   : > { %v169_v0 = vld [vmem:[%s4608_s28] sm:$0xff]  ;;  %v170_v2 = vld [vmem:[%s4608_s28 + $0x8] sm:$0xff]  ;;  %v171_v4 = vld [vmem:[%s4608_s28 + $0x10] sm:$0xff]  ;;  %4144 = vmatpush3.bf16.msra.mxu0 %v4646_v25  ;;  %4132 = vmatpush3.bf16.msra.mxu1 %v4646_v25  ;;  %s4525_s20 = smov 20   ;;  %s4526_s24 = smov 8  }
  0x1d   : > { %v185_v1 = vld [vmem:[%s4608_s28 + $0x80] sm:$0xff]  ;;  %205 = vxpose.xlu0.b32.start [1/16] (narrow) %v169_v0, 16  ;;  %v186_v3 = vld [vmem:[%s4608_s28 + $0x88] sm:$0xff]  ;;  %v187_v5 = vld [vmem:[%s4608_s28 + $0x90] sm:$0xff]  ;;  %s4527_s25 = smov 124   ;;  %s4528_s26 = smov 112   ;;  %v1095_v0 = vsub.f32 %v4722_v60, %v1094_v62 }
  0x1e   : > { %237 = vxpose.xlu1.b32.start [1/16] (narrow) %v185_v1, 16  ;;  %v172_v6 = vld [vmem:[%s4608_s28 + $0x18] sm:$0xff]  ;;  %v173_v8 = vld [vmem:[%s4608_s28 + $0x20] sm:$0xff]  ;;  %v174_v10 = vld [vmem:[%s4608_s28 + $0x28] sm:$0xff]  ;;  %s4529_s27 = smov 100   ;;  %s4531_s29 = smov 76   ;;  %v1102_v1 = vsub.f32 %v4727_v61, %v1101_v63 }
  0x1f   : > { %v188_v7 = vld [vmem:[%s4608_s28 + $0x98] sm:$0xff]  ;;  %v189_v9 = vld [vmem:[%s4608_s28 + $0xa0] sm:$0xff]  ;;  %v190_v11 = vld [vmem:[%s4608_s28 + $0xa8] sm:$0xff]  ;;  %s4532_s30 = smov 64   ;;  %s161_s4 = sand.u32 1, %s4507_s13  }
  0x20   : > { %v175_v12 = vld [vmem:[%s4608_s28 + $0x30] sm:$0xff]  ;;  %v176_v14 = vld [vmem:[%s4608_s28 + $0x38] sm:$0xff]  ;;  %v177_v16 = vld [vmem:[%s4608_s28 + $0x40] sm:$0xff] }
  0x21   : > { %206 = vxpose.xlu0.b32.cont [2/16] (narrow) %v170_v2, 16  ;;  %v191_v13 = vld [vmem:[%s4608_s28 + $0xb0] sm:$0xff]  ;;  %v192_v15 = vld [vmem:[%s4608_s28 + $0xb8] sm:$0xff]  ;;  %v193_v17 = vld [vmem:[%s4608_s28 + $0xc0] sm:$0xff]  ;;  %v4145_v2 = vpack.c.bf16 %v1101_v63, %v1094_v62 }
  0x22   : > { %238 = vxpose.xlu1.b32.cont [2/16] (narrow) %v186_v3, 16  ;;  %v178_v19 = vld [vmem:[%s4608_s28 + $0x48] sm:$0xff]  ;;  %v179_v26 = vld [vmem:[%s4608_s28 + $0x50] sm:$0xff]  ;;  %v180_v28 = vld [vmem:[%s4608_s28 + $0x58] sm:$0xff]  ;;  %v1096_v3 = vand.u32 4294901760, %v1095_v0 }
  0x23   : > { %v194_v20 = vld [vmem:[%s4608_s28 + $0xc8] sm:$0xff]  ;;  %v195_v27 = vld [vmem:[%s4608_s28 + $0xd0] sm:$0xff]  ;;  %v196_v29 = vld [vmem:[%s4608_s28 + $0xd8] sm:$0xff]  ;;  %4146 = vmatprep.subr.bf16.mxu0 %v4145_v2 }
  0x24   : > { %v181_v30 = vld [vmem:[%s4608_s28 + $0x60] sm:$0xff]  ;;  %v182_v32 = vld [vmem:[%s4608_s28 + $0x68] sm:$0xff]  ;;  %v183_v34 = vld [vmem:[%s4608_s28 + $0x70] sm:$0xff] }
  0x25   : > { %207 = vxpose.xlu0.b32.cont [3/16] (narrow) %v171_v4, 16  ;;  %v197_v31 = vld [vmem:[%s4608_s28 + $0xe0] sm:$0xff]  ;;  %v198_v33 = vld [vmem:[%s4608_s28 + $0xe8] sm:$0xff]  ;;  %v199_v35 = vld [vmem:[%s4608_s28 + $0xf0] sm:$0xff]  ;;  %v1103_v4 = vand.u32 4294901760, %v1102_v1 }
  0x26   : > { %239 = vxpose.xlu1.b32.cont [3/16] (narrow) %v187_v5, 16  ;;  %v184_v36 = vld [vmem:[%s4608_s28 + $0x78] sm:$0xff]  ;;  %v201_v38 = vld [vmem:[%s4608_s28 + $0x100] sm:$0xff]  ;;  %v202_v39 = vld [vmem:[%s4608_s28 + $0x108] sm:$0xff] }
  0x27   : > { %v200_v37 = vld [vmem:[%s4608_s28 + $0xf8] sm:$0xff]  ;;  %v203_v40 = vld [vmem:[%s4608_s28 + $0x110] sm:$0xff] }
  0x28   : > { %v204_v41 = vld [vmem:[%s4608_s28 + $0x118] sm:$0xff]  ;;  %s4530_s28 = smov 88  }
  0x29   : > { %208 = vxpose.xlu0.b32.cont [4/16] (narrow) %v172_v6, 16  ;;  %v4133_v6 = vpack.c.bf16 %v1103_v4, %v1096_v3 }
  0x2a   : > { %240 = vxpose.xlu1.b32.cont [4/16] (narrow) %v188_v7, 16 }
  0x2b   : > { %4134 = vmatprep.subr.bf16.mxu1 %v4133_v6 }
  0x2d   : > { %209 = vxpose.xlu0.b32.cont [5/16] (narrow) %v173_v8, 16 }
  0x2e   : > { %241 = vxpose.xlu1.b32.cont [5/16] (narrow) %v189_v9, 16 }
  0x31   : > { %210 = vxpose.xlu0.b32.cont [6/16] (narrow) %v174_v10, 16 }
  0x32   : > { %242 = vxpose.xlu1.b32.cont [6/16] (narrow) %v190_v11, 16 }
  0x35   : > { %211 = vxpose.xlu0.b32.cont [7/16] (narrow) %v175_v12, 16 }
  0x36   : > { %243 = vxpose.xlu1.b32.cont [7/16] (narrow) %v191_v13, 16 }
  0x39   : > { %212 = vxpose.xlu0.b32.cont [8/16] (narrow) %v176_v14, 16 }
  0x3a   : > { %244 = vxpose.xlu1.b32.cont [8/16] (narrow) %v192_v15, 16 }
  0x3d   : > { %213 = vxpose.xlu0.b32.cont [9/16] (narrow) %v177_v16, 16 }
  0x3e   : > { %245 = vxpose.xlu1.b32.cont [9/16] (narrow) %v193_v17, 16 }
  0x41   : > { %214 = vxpose.xlu0.b32.cont [10/16] (narrow) %v178_v19, 16 }
  0x42   : > { %246 = vxpose.xlu1.b32.cont [10/16] (narrow) %v194_v20, 16 }
  0x45   : > { %215 = vxpose.xlu0.b32.cont [11/16] (narrow) %v179_v26, 16 }
  0x46   : > { %247 = vxpose.xlu1.b32.cont [11/16] (narrow) %v195_v27, 16 }
  0x49   : > { %216 = vxpose.xlu0.b32.cont [12/16] (narrow) %v180_v28, 16 }
  0x4a   : > { %248 = vxpose.xlu1.b32.cont [12/16] (narrow) %v196_v29, 16 }
  0x4d   : > { %217 = vxpose.xlu0.b32.cont [13/16] (narrow) %v181_v30, 16 }
  0x4e   : > { %249 = vxpose.xlu1.b32.cont [13/16] (narrow) %v197_v31, 16 }
  0x51   : > { %218 = vxpose.xlu0.b32.cont [14/16] (narrow) %v182_v32, 16 }
  0x52   : > { %250 = vxpose.xlu1.b32.cont [14/16] (narrow) %v198_v33, 16 }
  0x55   : > { %219 = vxpose.xlu0.b32.cont [15/16] (narrow) %v183_v34, 16 }
  0x56   : > { %251 = vxpose.xlu1.b32.cont [15/16] (narrow) %v199_v35, 16 }
  0x59   : > { %220 = vxpose.xlu0.b32.end [16/16] (narrow) %v184_v36, 16 }
  0x5a   : > { %252 = vxpose.xlu1.b32.end [16/16] (narrow) %v200_v37, 16 }
  0x5d   : > { %269 = vxpose.xlu0.b32.start [1/4] (short) (narrow) %v201_v38, 16 }
  0x61   : > { %270 = vxpose.xlu0.b32.cont [2/4] (short) (narrow) %v202_v39, 16 }
  0x65   : > { %271 = vxpose.xlu0.b32.cont [3/4] (short) (narrow) %v203_v40, 16 }
  0x69   : > { %272 = vxpose.xlu0.b32.end [4/4] (short) (narrow) %v204_v41, 16 }
  0x9d   : > { %v221_v42 = vpop.trf.xlu0 }
  0x9e   : > { %v4668_v43 = vpop.trf.xlu1  ;;  %305 = vrot.lane.b32.xlu1 %v221_v42, %s4517_s6  ;;  %v444_v44 = vsel %vm443_vm1, %v221_v42, 0 }
  0x9f   : > { %v4672_v45 = vand.u32 4294901760, %v444_v44 }
  0xa1   : > { %v222_v46 = vpop.trf.xlu0  ;;  %v4675_v47 = vsub.f32 %v444_v44, %v4672_v45 }
  0xa2   : > { %309 = vrot.lane.b32.xlu1 %v221_v42, %s4518_s7  ;;  %307 = vrot.lane.b32.xlu0 %v222_v46, %s4517_s6  ;;  %v446_v48 = vsel %vm443_vm1, %v222_v46, 0  ;;  %v4680_v49 = vpop.trf.xlu1 }
  0xa3   : > { %5619 = vst [vmem:[#allocation5_spill] sm:$0xff] %v4675_v47  ;;  %v613_v50 = vand.u32 4294901760, %v4675_v47  ;;  %v4683_v51 = vand.u32 4294901760, %v446_v48 }
  0xa5   : > { %3905 = vmatprep.mubr.f32.mxu0 %v613_v50  ;;  %v614_v52 = vsub.f32 %v4675_v47, %v613_v50  ;;  %v4687_v53 = vsub.f32 %v446_v48, %v4683_v51 }
  0xa6   : > { %374 = vrot.lane.b32.xlu1 %v4668_v43, %s4517_s6  ;;  %380 = vrot.lane.b32.xlu0 %v4680_v49, %s4518_s7 }
  0xa7   : > { %5620 = vst [vmem:[#allocation6_spill] sm:$0xff] %v4687_v53  ;;  %v615_v54 = vand.u32 4294901760, %v614_v52  ;;  %v623_v55 = vand.u32 4294901760, %v4687_v53 }
  0xa9   : > { %3677 = vmatprep.mubr.f32.mxu1 %v615_v54  ;;  %3906 = vmatmul.mubr.f32.vlgmr.msra.gmra.mrb[0].mxu0 %v623_v55  ;;  %v624_v56 = vsub.f32 %v4687_v53, %v623_v55 }
  0xaa   : > { %313 = vrot.lane.b32.xlu1 %v221_v42, %s4519_s8  ;;  %319 = vrot.lane.b32.xlu0 %v222_v46, %s4520_s9 }
  0xab   : > { %v625_v57 = vand.u32 4294901760, %v624_v56  ;;  %4148 = vmatpush3.bf16.msra.mxu0 %v4145_v2 }
  0xac   : > { %4150 = vmatprep.subr.bf16.mxu0 %v4646_v25 }
  0xad   : > { %3678 = vmatmul.mubr.f32.vlgmr.msra.gmra.mrb[0].mxu1 %v625_v57 }
  0xae   : > { %378 = vrot.lane.b32.xlu1 %v4668_v43, %s4518_s7  ;;  %384 = vrot.lane.b32.xlu0 %v4680_v49, %s4519_s8 }
  0xaf   : > { %4136 = vmatpush3.bf16.msra.mxu1 %v4133_v6 }
  0xb2   : > { %317 = vrot.lane.b32.xlu1 %v221_v42, %s4520_s9  ;;  %323 = vrot.lane.b32.xlu0 %v222_v46, %s4521_s10 }
  0xb6   : > { %382 = vrot.lane.b32.xlu1 %v4668_v43, %s4519_s8  ;;  %388 = vrot.lane.b32.xlu0 %v4680_v49, %s4520_s9 }
  0xba   : > { %321 = vrot.lane.b32.xlu1 %v221_v42, %s4521_s10  ;;  %327 = vrot.lane.b32.xlu0 %v222_v46, %s4522_s11 }
  0xbe   : > { %386 = vrot.lane.b32.xlu1 %v4668_v43, %s4520_s9 }
  0xc2   : > { %325 = vrot.lane.b32.xlu1 %v221_v42, %s4522_s11 }
  0xc6   : > { %311 = vrot.lane.b32.xlu1 %v222_v46, %s4518_s7  ;;  %s4393_s7 = smul.u32 384, %s161_s4 }
  0xca   : > { %376 = vrot.lane.b32.xlu1 %v4680_v49, %s4517_s6 }
  0xce   : > { %315 = vrot.lane.b32.xlu1 %v222_v46, %s4519_s8  ;;  %s5349_s8 = scalar_lea.vmem [#allocation2], %s4393_s7 }
  0xd2   : > { %392 = vrot.lane.b32.xlu1 %v4668_v43, %s4521_s10 }
  0xd6   : > { %396 = vrot.lane.b32.xlu1 %v4680_v49, %s4521_s10 }
  0xda   : > { %329 = vrot.lane.b32.xlu1 %v221_v42, %s4523_s17 }
  0xdd   : > { %v285_v58 = vpop.trf.xlu0 }
  0xde   : > { %403 = vrot.lane.b32.xlu1 %v285_v58, %s4522_s11  ;;  %394 = vrot.lane.b32.xlu0 %v285_v58, %s4521_s10 }
  0xe1   : > { %v286_v59 = vpop.trf.xlu0 }
  0xe2   : > { %333 = vrot.lane.b32.xlu1 %v221_v42, %s4524_s19  ;;  %398 = vrot.lane.b32.xlu0 %v286_v59, %s4521_s10 }
  0xe6   : > { %407 = vrot.lane.b32.xlu1 %v285_v58, %s4523_s17  ;;  %331 = vrot.lane.b32.xlu0 %v222_v46, %s4523_s17 }
  0xea   : > { %337 = vrot.lane.b32.xlu1 %v221_v42, %s4525_s20  ;;  %405 = vrot.lane.b32.xlu0 %v286_v59, %s4522_s11 }
  0xee   : > { %343 = vrot.lane.b32.xlu1 %v221_v42, %s4526_s24  ;;  %335 = vrot.lane.b32.xlu0 %v222_v46, %s4524_s19  ;;  %s4395_s19 = smul.u32 6144, %s4576_s16  ;;  %s5527_s16 = scalar_lea.sflag [#allocation3], %s161_s4 }
  0xf2   : > { %347 = vrot.lane.b32.xlu1 %v222_v46, %s4526_s24  ;;  %409 = vrot.lane.b32.xlu0 %v286_v59, %s4523_s17 }
  0xf6   : > { %354 = vrot.lane.b32.xlu1 %v4668_v43, %s4527_s25  ;;  %339 = vrot.lane.b32.xlu0 %v222_v46, %s4525_s20  ;;  %s3257_s20 = sshll.u32 %s5349_s8, 4  ;;  %s5519_s20 = int_to_ptr.vmem [resolvable:$true] %s3257_s20 }
  0xfa   : > { %358 = vrot.lane.b32.xlu1 %v4668_v43, %s4528_s26  ;;  %345 = vrot.lane.b32.xlu0 %v4668_v43, %s4526_s24 }
  0xfe   : > { %362 = vrot.lane.b32.xlu1 %v4668_v43, %s4529_s27  ;;  %349 = vrot.lane.b32.xlu0 %v4680_v49, %s4526_s24 }
 0x102   : > { %366 = vrot.lane.b32.xlu1 %v4668_v43, %s4530_s28  ;;  %356 = vrot.lane.b32.xlu0 %v4680_v49, %s4527_s25 }
 0x106   : > { %370 = vrot.lane.b32.xlu1 %v4668_v43, %s4531_s29  ;;  %360 = vrot.lane.b32.xlu0 %v4680_v49, %s4528_s26 }
 0x10a   : > { %411 = vrot.lane.b32.xlu1 %v4668_v43, %s4532_s30  ;;  %364 = vrot.lane.b32.xlu0 %v4680_v49, %s4529_s27  ;;  %s5517_s27 = scalar_lea.hbm %s5572_s3, %s4395_s19 }
 0x10e   : > { %368 = vrot.lane.b32.xlu0 %v4680_v49, %s4530_s28  ;;  %s4453_s28 = scalar_lea.vmem %s5519_s20, 6144 }
 0x10f   : > { %p4454_p11 = scmp.ne.s32.totalorder %s5519_s20, %s4453_s28 }
 0x110   : > { %v306_v5 = vpop.permute.xlu1 %305 }
 0x111   : > { %v448_v7 = vsel %vm443_vm1, %v306_v5, 0  ;;  %p4455_p12 = pnand %p4454_p11, %p4593_p5 }
 0x112   : > { %v4739_v8 = vand.u32 4294901760, %v448_v7  ;;  %372 = vrot.lane.b32.xlu0 %v4680_v49, %s4531_s29  ;;  %s4533_s29 = smov [#allocation2]  }
 0x113   : > { %p4456_p13 = pneg %p4455_p12 }
 0x114   : > { %v4743_v9 = vsub.f32 %v448_v7, %v4739_v8  ;;  %v310_v10 = vpop.permute.xlu1 %309  ;;  %v308_v11 = vpop.permute.xlu0 %307 }
 0x115   : > { %v452_v12 = vsel %vm443_vm1, %v310_v10, 0  ;;  %v450_v13 = vsel %vm443_vm1, %v308_v11, 0 }
 0x116   : > { %5621 = vst [vmem:[#allocation7_spill] sm:$0xff] %v4743_v9  ;;  %v4747_v14 = vand.u32 4294901760, %v452_v12  ;;  %413 = vrot.lane.b32.xlu0 %v4680_v49, %s4532_s30  ;;  %v4751_v15 = vand.u32 4294901760, %v450_v13  ;;  %v633_v16 = vand.u32 4294901760, %v4743_v9 }
 0x118   : > { %v4755_v17 = vsub.f32 %v452_v12, %v4747_v14  ;;  %v4758_v18 = vsub.f32 %v450_v13, %v4751_v15  ;;  %v375_v19 = vpop.permute.xlu1 %374  ;;  %3908 = vmatprep.mubr.f32.mxu0 %v633_v16  ;;  %v634_v20 = vsub.f32 %v4743_v9, %v633_v16  ;;  %v381_v31 = vpop.permute.xlu0 %380 }
 0x119   : > { %415 = vrot.lane.b32.xlu1 %v375_v19, %s4532_s30 }
 0x11a   : > { %5622 = vst [vmem:[#allocation8_spill] sm:$0xff] %v4755_v17  ;;  %5623 = vst [vmem:[#allocation9_spill] sm:$0xff] %v4758_v18  ;;  %v643_v21 = vand.u32 4294901760, %v4758_v18  ;;  %v635_v22 = vand.u32 4294901760, %v634_v20  ;;  %v653_v23 = vand.u32 4294901760, %v4755_v17 }
 0x11c   : > { %v314_v24 = vpop.permute.xlu1 %313  ;;  %3909 = vmatmul.mubr.f32.gmra.mrb[2].mxu0 %v643_v21  ;;  %3680 = vmatprep.mubr.f32.mxu1 %v635_v22  ;;  %v644_v26 = vsub.f32 %v4758_v18, %v643_v21  ;;  %v654_v27 = vsub.f32 %v4755_v17, %v653_v23  ;;  %v320_v33 = vpop.permute.xlu0 %319 }
 0x11d   : > { %3911 = vmatprep.mubr.f32.mxu0 %v653_v23  ;;  %v456_v37 = vsel %vm443_vm1, %v314_v24, 0  ;;  %v462_v48 = vsel %vm443_vm1, %v320_v33, 0 }
 0x11e   : > { %v645_v28 = vand.u32 4294901760, %v644_v26  ;;  %v655_v29 = vand.u32 4294901760, %v654_v27  ;;  %v4770_v39 = vand.u32 4294901760, %v456_v37  ;;  %v4787_v58 = vand.u32 4294901760, %v462_v48 }
 0x120   : > { %v379_v30 = vpop.permute.xlu1 %378  ;;  %3681 = vmatmul.mubr.f32.gmra.mrb[2].mxu1 %v645_v28  ;;  %v385_v36 = vpop.permute.xlu0 %384  ;;  %v4773_v42 = vsub.f32 %v456_v37, %v4770_v39  ;;  %v4801_v6 = vsub.f32 %v462_v48, %v4787_v58 }
 0x121   : > { %419 = vrot.lane.b32.xlu1 %v379_v30, %s4532_s30  ;;  %3683 = vmatprep.mubr.f32.mxu1 %v655_v29 }
 0x122   : > { %5624 = vst [vmem:[#allocation10_spill] sm:$0xff] %v4773_v42  ;;  %v673_v52 = vand.u32 4294901760, %v4773_v42  ;;  %5627 = vst [vmem:[#allocation13_spill] sm:$0xff] %v4801_v6  ;;  %v703_v28 = vand.u32 4294901760, %v4801_v6 }
 0x124   : > { %v318_v32 = vpop.permute.xlu1 %317  ;;  %v324_v40 = vpop.permute.xlu0 %323  ;;  %v674_v62 = vsub.f32 %v4773_v42, %v673_v52 }
 0x125   : > { %v460_v43 = vsel %vm443_vm1, %v318_v32, 0  ;;  %v466_v0 = vsel %vm443_vm1, %v324_v40, 0 }
 0x126   : > { %v4781_v54 = vand.u32 4294901760, %v460_v43  ;;  %v4805_v10 = vand.u32 4294901760, %v466_v0  ;;  %v675_v13 = vand.u32 4294901760, %v674_v62 }
 0x128   : > { %v383_v34 = vpop.permute.xlu1 %382  ;;  %v389_v49 = vpop.permute.xlu0 %388  ;;  %v4793_v63 = vsub.f32 %v460_v43, %v4781_v54  ;;  %v4821_v24 = vsub.f32 %v466_v0, %v4805_v10 }
 0x129   : > { %423 = vrot.lane.b32.xlu1 %v383_v34, %s4532_s30 }
 0x12a   : > { %5626 = vst [vmem:[#allocation12_spill] sm:$0xff] %v4793_v63  ;;  %v693_v21 = vand.u32 4294901760, %v4793_v63  ;;  %5630 = vst [vmem:[#allocation16_spill] sm:$0xff] %v4821_v24  ;;  %v723_v37 = vand.u32 4294901760, %v4821_v24 }
 0x12c   : > { %v322_v35 = vpop.permute.xlu1 %321  ;;  %v328_v2 = vpop.permute.xlu0 %327  ;;  %v694_v30 = vsub.f32 %v4793_v63, %v693_v21 }
 0x12d   : > { %v464_v55 = vsel %vm443_vm1, %v322_v35, 0  ;;  %v470_v19 = vsel %vm443_vm1, %v328_v2, 0 }
 0x12e   : > { %v4796_v1 = vand.u32 4294901760, %v464_v55  ;;  %v4823_v26 = vand.u32 4294901760, %v470_v19 }
 0x130   : > { %v387_v38 = vpop.permute.xlu1 %386  ;;  %v4810_v16 = vsub.f32 %v464_v55, %v4796_v1  ;;  %v4835_v34 = vsub.f32 %v470_v19, %v4823_v26 }
 0x131   : > { %427 = vrot.lane.b32.xlu1 %v387_v38, %s4532_s30  ;;  %v695_v38 = vand.u32 4294901760, %v694_v30 }
 0x132   : > { %5628 = vst [vmem:[#allocation14_spill] sm:$0xff] %v4810_v16  ;;  %5632 = vst [vmem:[#allocation18_spill] sm:$0xff] %v4835_v34 }
 0x134   : > { %v326_v41 = vpop.permute.xlu1 %325 }
 0x135   : > { %v468_v3 = vsel %vm443_vm1, %v326_v41, 0 }
 0x136   : > { %v4813_v20 = vand.u32 4294901760, %v468_v3 }
 0x138   : > { %v312_v44 = vpop.permute.xlu1 %311  ;;  %v4828_v29 = vsub.f32 %v468_v3, %v4813_v20 }
 0x139   : > { %v454_v46 = vsel %vm443_vm1, %v312_v44, 0 }
 0x13a   : > { %v4778_v50 = vand.u32 4294901760, %v454_v46  ;;  %5631 = vst [vmem:[#allocation17_spill] sm:$0xff] %v4828_v29  ;;  %v733_v41 = vand.u32 4294901760, %v4828_v29 }
 0x13c   : > { %v4785_v56 = vsub.f32 %v454_v46, %v4778_v50  ;;  %v377_v57 = vpop.permute.xlu1 %376 }
 0x13d   : > { %417 = vrot.lane.b32.xlu0 %v377_v57, %s4532_s30  ;;  %v734_v57 = vsub.f32 %v4828_v29, %v733_v41 }
 0x13e   : > { %5625 = vst [vmem:[#allocation11_spill] sm:$0xff] %v4785_v56  ;;  %v663_v59 = vand.u32 4294901760, %v4785_v56 }
 0x140   : > { %v316_v4 = vpop.permute.xlu1 %315  ;;  %3912 = vmatmul.mubr.f32.gmra.mrb[4].mxu0 %v663_v59  ;;  %v664_v5 = vsub.f32 %v4785_v56, %v663_v59 }
 0x141   : > { %v458_v7 = vsel %vm443_vm1, %v316_v4, 0  ;;  %3914 = vmatprep.mubr.f32.mxu0 %v673_v52  ;;  %421 = vrot.lane.b32.xlu0 %v381_v31, %s4532_s30  ;;  %v713_v31 = vand.u32 4294901760, %v4810_v16  ;;  %v743_v52 = vand.u32 4294901760, %v4835_v34 }
 0x142   : > { %v4807_v11 = vand.u32 4294901760, %v458_v7  ;;  %v665_v12 = vand.u32 4294901760, %v664_v5 }
 0x143   : > { %v714_v40 = vsub.f32 %v4810_v16, %v713_v31  ;;  %v744_v5 = vsub.f32 %v4835_v34, %v743_v52 }
 0x144   : > { %v4817_v22 = vsub.f32 %v458_v7, %v4807_v11  ;;  %v393_v23 = vpop.permute.xlu1 %392  ;;  %3684 = vmatmul.mubr.f32.gmra.mrb[4].mxu1 %v665_v12  ;;  %v735_v7 = vand.u32 4294901760, %v734_v57 }
 0x145   : > { %3686 = vmatprep.mubr.f32.mxu1 %v675_v13  ;;  %425 = vrot.lane.b32.xlu0 %v385_v36, %s4532_s30  ;;  %v704_v36 = vsub.f32 %v4801_v6, %v703_v28  ;;  %v715_v55 = vand.u32 4294901760, %v714_v40 }
 0x146   : > { %5629 = vst [vmem:[#allocation15_spill] sm:$0xff] %v4817_v22  ;;  %v683_v27 = vand.u32 4294901760, %v4817_v22 }
 0x147   : > { %v705_v48 = vand.u32 4294901760, %v704_v36 }
 0x148   : > { %v397_v32 = vpop.permute.xlu1 %396  ;;  %3915 = vmatmul.mubr.f32.gmra.mrb[6].mxu0 %v683_v27  ;;  %v684_v33 = vsub.f32 %v4817_v22, %v683_v27 }
 0x149   : > { %3917 = vmatprep.mubr.f32.mxu0 %v693_v21  ;;  %429 = vrot.lane.b32.xlu0 %v389_v49, %s4532_s30  ;;  %v724_v49 = vsub.f32 %v4821_v24, %v723_v37 }
 0x14a   : > { %v685_v35 = vand.u32 4294901760, %v684_v33 }
 0x14b   : > { %v725_v3 = vand.u32 4294901760, %v724_v49 }
 0x14c   : > { %v330_v43 = vpop.permute.xlu1 %329  ;;  %3687 = vmatmul.mubr.f32.gmra.mrb[6].mxu1 %v685_v35  ;;  %3918 = vmatmul.mubr.f32.gmra.mrb[8].mxu0 %v703_v28  ;;  %v745_v28 = vand.u32 4294901760, %v744_v5 }
 0x14d   : > { %v472_v44 = vsel %vm443_vm1, %v330_v43, 0  ;;  %3689 = vmatprep.mubr.f32.mxu1 %v695_v38  ;;  %3920 = vmatprep.mubr.f32.mxu0 %v713_v31 }
 0x14e   : > { %v4842_v46 = vand.u32 4294901760, %v472_v44 }
 0x150   : > { %v4848_v59 = vsub.f32 %v472_v44, %v4842_v46  ;;  %v404_v62 = vpop.permute.xlu1 %403  ;;  %3690 = vmatmul.mubr.f32.gmra.mrb[8].mxu1 %v705_v48  ;;  %3921 = vmatmul.mubr.f32.gmra.mrb[10].mxu0 %v723_v37  ;;  %v395_v0 = vpop.permute.xlu0 %394 }
 0x151   : > { %3692 = vmatprep.mubr.f32.mxu1 %v715_v55  ;;  %3923 = vmatprep.mubr.f32.mxu0 %v733_v41  ;;  %v401_v2 = vsel %vm400_vm2, %v393_v23, %v395_v0 }
 0x152   : > { %5633 = vst [vmem:[#allocation19_spill] sm:$0xff] %v4848_v59  ;;  %431 = vrot.lane.b32.xlu1 %v401_v2, %s4532_s30  ;;  %v753_v4 = vand.u32 4294901760, %v4848_v59 }
 0x154   : > { %v334_v12 = vpop.permute.xlu1 %333  ;;  %3693 = vmatmul.mubr.f32.gmra.mrb[10].mxu1 %v725_v3  ;;  %3924 = vmatmul.mubr.f32.gmra.mrb[12].mxu0 %v743_v52  ;;  %v399_v13 = vpop.permute.xlu0 %398  ;;  %v754_v19 = vsub.f32 %v4848_v59, %v753_v4 }
 0x155   : > { %v476_v21 = vsel %vm443_vm1, %v334_v12, 0  ;;  %3695 = vmatprep.mubr.f32.mxu1 %v735_v7  ;;  %3926 = vmatprep.mubr.f32.mxu0 %v753_v4  ;;  %v402_v23 = vsel %vm400_vm2, %v397_v32, %v399_v13 }
 0x156   : > { %v4857_v27 = vand.u32 4294901760, %v476_v21  ;;  %435 = vrot.lane.b32.xlu1 %v404_v62, %s4532_s30  ;;  %433 = vrot.lane.b32.xlu0 %v402_v23, %s4532_s30  ;;  %v755_v30 = vand.u32 4294901760, %v754_v19  ;;  %v4891_v19 = vpack.c.bf16 %v4727_v61, %v4722_v60 }
 0x158   : > { %v4862_v31 = vsub.f32 %v476_v21, %v4857_v27  ;;  %v408_v33 = vpop.permute.xlu1 %407  ;;  %3696 = vmatmul.mubr.f32.gmra.mrb[12].mxu1 %v745_v28  ;;  %v332_v35 = vpop.permute.xlu0 %331  ;;  %4138 = vmatprep.subr.bf16.mxu1 %v4891_v19 }
 0x159   : > { %v474_v36 = vsel %vm443_vm1, %v332_v35, 0  ;;  %3698 = vmatprep.mubr.f32.mxu1 %v755_v30 }
 0x15a   : > { %5634 = vst [vmem:[#allocation20_spill] sm:$0xff] %v4862_v31  ;;  %v4865_v37 = vand.u32 4294901760, %v474_v36  ;;  %439 = vrot.lane.b32.xlu1 %v408_v33, %s4532_s30  ;;  %v773_v32 = vand.u32 4294901760, %v4862_v31 }
 0x15c   : > { %v4870_v38 = vsub.f32 %v474_v36, %v4865_v37  ;;  %v338_v40 = vpop.permute.xlu1 %337  ;;  %v406_v41 = vpop.permute.xlu0 %405  ;;  %v774_v49 = vsub.f32 %v4862_v31, %v773_v32 }
 0x15d   : > { %v480_v43 = vsel %vm443_vm1, %v338_v40, 0  ;;  %437 = vrot.lane.b32.xlu0 %v406_v41, %s4532_s30 }
 0x15e   : > { %5635 = vst [vmem:[#allocation21_spill] sm:$0xff] %v4870_v38  ;;  %v4874_v44 = vand.u32 4294901760, %v480_v43  ;;  %v763_v48 = vand.u32 4294901760, %v4870_v38  ;;  %v775_v4 = vand.u32 4294901760, %v774_v49 }
 0x160   : > { %v4879_v52 = vsub.f32 %v480_v43, %v4874_v44  ;;  %v344_v55 = vpop.permute.xlu1 %343  ;;  %3927 = vmatmul.mubr.f32.gmra.mrb[14].mxu0 %v763_v48  ;;  %v336_v57 = vpop.permute.xlu0 %335  ;;  %v764_v62 = vsub.f32 %v4870_v38, %v763_v48 }
 0x161   : > { %v478_v0 = vsel %vm443_vm1, %v336_v57, 0  ;;  %3929 = vmatprep.mubr.f32.mxu0 %v773_v32 }
 0x162   : > { %5636 = vst [vmem:[#allocation22_spill] sm:$0xff] %v4879_v52  ;;  %v4883_v2 = vand.u32 4294901760, %v478_v0  ;;  %v765_v3 = vand.u32 4294901760, %v764_v62  ;;  %v793_v5 = vand.u32 4294901760, %v4879_v52 }
 0x164   : > { %v4887_v7 = vsub.f32 %v478_v0, %v4883_v2  ;;  %v348_v12 = vpop.permute.xlu1 %347  ;;  %3699 = vmatmul.mubr.f32.gmra.mrb[14].mxu1 %v765_v3  ;;  %v410_v13 = vpop.permute.xlu0 %409  ;;  %v794_v23 = vsub.f32 %v4879_v52, %v793_v5 }
 0x165   : > { %3701 = vmatprep.mubr.f32.mxu1 %v775_v4  ;;  %441 = vrot.lane.b32.xlu0 %v410_v13, %s4532_s30  ;;  %s4457_s30 = sshll.u32 %s4533_s29, 4  ;;  %s4458_s30 = int_to_ptr.vmem [resolvable:$false] %s4457_s30 }
 0x166   : > { %5637 = vst [vmem:[#allocation23_spill] sm:$0xff] %v4887_v7  ;;  %v783_v21 = vand.u32 4294901760, %v4887_v7  ;;  %v795_v32 = vand.u32 4294901760, %v794_v23  ;;  %s4459_s5 = scalar_lea.vmem %s4458_s30, 12288  ;;  %p4460_p0 = scmp.lt.s32.totalorder %s5519_s20, %s4458_s30 }
 0x167   : > { %p4461_p1 = scmp.lt.s32.totalorder %s4459_s5, %s4453_s28 }
 0x168   : > { %v355_v28 = vpop.permute.xlu1 %354  ;;  %3930 = vmatmul.mubr.f32.gmra.mrb[16].mxu0 %v783_v21  ;;  %v340_v30 = vpop.permute.xlu0 %339  ;;  %v784_v33 = vsub.f32 %v4887_v7, %v783_v21 }
 0x169   : > { %v488_v35 = vsel %vm443_vm1, %v355_v28, 0  ;;  %v482_v36 = vsel %vm443_vm1, %v340_v30, 0  ;;  %3932 = vmatprep.mubr.f32.mxu0 %v793_v5  ;;  %p4462_p2 = por %p4461_p1, %p4460_p0 }
 0x16a   : > { %v4900_v60 = vand.u32 4294901760, %v482_v36  ;;  %v785_v61 = vand.u32 4294901760, %v784_v33  ;;  %v4902_v40 = vand.u32 4294901760, %v488_v35 }
 0x16b   : > { %p4463_p3 = pnand %p4462_p2, %p4456_p13 }
 0x16c   : > { %v4905_v41 = vsub.f32 %v482_v36, %v4900_v60  ;;  %v359_v43 = vpop.permute.xlu1 %358  ;;  %3702 = vmatmul.mubr.f32.gmra.mrb[16].mxu1 %v785_v61  ;;  %v346_v48 = vpop.permute.xlu0 %345  ;;  %v4916_v5 = vsub.f32 %v488_v35, %v4902_v40 }
 0x16d   : > { %v492_v49 = vsel %vm443_vm1, %v359_v43, 0  ;;  %v352_v57 = vsel %vm351_vm3, %v344_v55, %v346_v48  ;;  %3704 = vmatprep.mubr.f32.mxu1 %v795_v32 }
 0x16e   : > { %5638 = vst [vmem:[#allocation24_spill] sm:$0xff] %v4905_v41  ;;  %v484_v62 = vsel %vm443_vm1, %v352_v57, 0  ;;  %v803_v0 = vand.u32 4294901760, %v4905_v41  ;;  %v4911_v3 = vand.u32 4294901760, %v492_v49  ;;  %5639 = vst [vmem:[#allocation25_spill] sm:$0xff] %v4916_v5 }
 0x16f   : > { %v4913_v4 = vand.u32 4294901760, %v484_v62 }
 0x170   : > { %v363_v13 = vpop.permute.xlu1 %362  ;;  %3933 = vmatmul.mubr.f32.gmra.mrb[18].mxu0 %v803_v0  ;;  %v350_v21 = vpop.permute.xlu0 %349  ;;  %v804_v23 = vsub.f32 %v4905_v41, %v803_v0  ;;  %v4926_v61 = vsub.f32 %v492_v49, %v4911_v3 }
 0x171   : > { %v4920_v28 = vsub.f32 %v484_v62, %v4913_v4  ;;  %v496_v55 = vsel %vm443_vm1, %v363_v13, 0  ;;  %v353_v30 = vsel %vm351_vm3, %v348_v12, %v350_v21  ;;  %v833_v62 = vand.u32 4294901760, %v4916_v5 }
 0x172   : > { %v486_v33 = vsel %vm443_vm1, %v353_v30, 0  ;;  %v805_v36 = vand.u32 4294901760, %v804_v23  ;;  %5641 = vst [vmem:[#allocation27_spill] sm:$0xff] %v4926_v61  ;;  %v4928_v35 = vand.u32 4294901760, %v496_v55  ;;  %v853_v41 = vand.u32 4294901760, %v4926_v61 }
 0x173   : > { %5640 = vst [vmem:[#allocation26_spill] sm:$0xff] %v4920_v28  ;;  %v4930_v32 = vand.u32 4294901760, %v486_v33  ;;  %v813_v43 = vand.u32 4294901760, %v4920_v28  ;;  %v834_v7 = vsub.f32 %v4916_v5, %v833_v62 }
 0x174   : > { %v367_v48 = vpop.permute.xlu1 %366  ;;  %3705 = vmatmul.mubr.f32.gmra.mrb[18].mxu1 %v805_v36  ;;  %v357_v57 = vpop.permute.xlu0 %356  ;;  %v4943_v23 = vsub.f32 %v496_v55, %v4928_v35  ;;  %v854_v59 = vsub.f32 %v4926_v61, %v853_v41 }
 0x175   : > { %v4935_v0 = vsub.f32 %v486_v33, %v4930_v32  ;;  %v500_v12 = vsel %vm443_vm1, %v367_v48, 0  ;;  %v490_v13 = vsel %vm443_vm1, %v357_v57, 0  ;;  %3935 = vmatprep.mubr.f32.mxu0 %v813_v43  ;;  %v814_v49 = vsub.f32 %v4920_v28, %v813_v43 }
 0x176   : > { %v4940_v21 = vand.u32 4294901760, %v490_v13  ;;  %5643 = vst [vmem:[#allocation29_spill] sm:$0xff] %v4943_v23  ;;  %v4947_v52 = vand.u32 4294901760, %v500_v12  ;;  %v873_v5 = vand.u32 4294901760, %v4943_v23  ;;  %v855_v24 = vand.u32 4294901760, %v854_v59 }
 0x177   : > { %5642 = vst [vmem:[#allocation28_spill] sm:$0xff] %v4935_v0  ;;  %v815_v30 = vand.u32 4294901760, %v814_v49  ;;  %v823_v36 = vand.u32 4294901760, %v4935_v0 }
 0x178   : > { %v4950_v33 = vsub.f32 %v490_v13, %v4940_v21  ;;  %v371_v48 = vpop.permute.xlu1 %370  ;;  %v361_v57 = vpop.permute.xlu0 %360 }
 0x179   : > { %v504_v43 = vsel %vm443_vm1, %v371_v48, 0  ;;  %v494_v28 = vsel %vm443_vm1, %v361_v57, 0  ;;  %3707 = vmatprep.mubr.f32.mxu1 %v815_v30  ;;  %3936 = vmatmul.mubr.f32.gmra.mrb[20].mxu0 %v823_v36  ;;  %v824_v55 = vsub.f32 %v4935_v0, %v823_v36  ;;  %v4964_v48 = vsub.f32 %v500_v12, %v4947_v52 }
 0x17a   : > { %5644 = vst [vmem:[#allocation30_spill] sm:$0xff] %v4950_v33  ;;  %v4956_v49 = vand.u32 4294901760, %v494_v28  ;;  %3938 = vmatprep.mubr.f32.mxu0 %v833_v62  ;;  %v843_v31 = vand.u32 4294901760, %v4950_v33  ;;  %v4959_v38 = vand.u32 4294901760, %v504_v43  ;;  %v835_v0 = vand.u32 4294901760, %v834_v7 }
 0x17b   : > { %v825_v13 = vand.u32 4294901760, %v824_v55  ;;  %5645 = vst [vmem:[#allocation31_spill] sm:$0xff] %v4964_v48  ;;  %v874_v7 = vsub.f32 %v4943_v23, %v873_v5 }
 0x17c   : > { %v4967_v30 = vsub.f32 %v494_v28, %v4956_v49  ;;  %v412_v57 = vpop.permute.xlu1 %411  ;;  %v365_v36 = vpop.permute.xlu0 %364  ;;  %v844_v62 = vsub.f32 %v4950_v33, %v843_v31  ;;  %v4976_v28 = vsub.f32 %v504_v43, %v4959_v38 }
 0x17d   : > { %v508_v34 = vsel %vm443_vm1, %v412_v57, 0  ;;  %v498_v29 = vsel %vm443_vm1, %v365_v36, 0  ;;  %3708 = vmatmul.mubr.f32.gmra.mrb[20].mxu1 %v825_v13  ;;  %3939 = vmatmul.mubr.f32.gmra.mrb[22].mxu0 %v843_v31 }
 0x17e   : > { %5646 = vst [vmem:[#allocation32_spill] sm:$0xff] %v4967_v30  ;;  %v4972_v55 = vand.u32 4294901760, %v498_v29  ;;  %3710 = vmatprep.mubr.f32.mxu1 %v835_v0  ;;  %3941 = vmatprep.mubr.f32.mxu0 %v853_v41  ;;  %v845_v12 = vand.u32 4294901760, %v844_v62  ;;  %v863_v61 = vand.u32 4294901760, %v4967_v30  ;;  %5647 = vst [vmem:[#allocation33_spill] sm:$0xff] %v4976_v28  ;;  %v4979_v33 = vand.u32 4294901760, %v508_v34 }
 0x17f   : > { %v893_v0 = vand.u32 4294901760, %v4964_v48  ;;  %v875_v62 = vand.u32 4294901760, %v874_v7 }
 0x180   : > { %v4982_v57 = vsub.f32 %v498_v29, %v4972_v55  ;;  %v369_v13 = vpop.permute.xlu0 %368  ;;  %v864_v31 = vsub.f32 %v4967_v30, %v863_v61  ;;  %v913_v29 = vand.u32 4294901760, %v4976_v28  ;;  %v4992_v23 = vsub.f32 %v508_v34, %v4979_v33 }
 0x181   : > { %v502_v41 = vsel %vm443_vm1, %v369_v13, 0  ;;  %3711 = vmatmul.mubr.f32.gmra.mrb[22].mxu1 %v845_v12  ;;  %3942 = vmatmul.mubr.f32.gmra.mrb[24].mxu0 %v863_v61  ;;  %v894_v61 = vsub.f32 %v4964_v48, %v893_v0 }
 0x182   : > { %5648 = vst [vmem:[#allocation34_spill] sm:$0xff] %v4982_v57  ;;  %v4987_v36 = vand.u32 4294901760, %v502_v41  ;;  %3713 = vmatprep.mubr.f32.mxu1 %v855_v24  ;;  %3944 = vmatprep.mubr.f32.mxu0 %v873_v5  ;;  %v865_v59 = vand.u32 4294901760, %v864_v31  ;;  %v883_v43 = vand.u32 4294901760, %v4982_v57  ;;  %5649 = vst [vmem:[#allocation35_spill] sm:$0xff] %v4992_v23  ;;  %v914_v13 = vsub.f32 %v4976_v28, %v913_v29 }
 0x184   : > { %v4995_v30 = vsub.f32 %v502_v41, %v4987_v36  ;;  %v373_v16 = vpop.permute.xlu0 %372  ;;  %v884_v12 = vsub.f32 %v4982_v57, %v883_v43  ;;  %v895_v57 = vand.u32 4294901760, %v894_v61 }
 0x185   : > { %v506_v24 = vsel %vm443_vm1, %v373_v16, 0  ;;  %3714 = vmatmul.mubr.f32.gmra.mrb[24].mxu1 %v865_v59  ;;  %3945 = vmatmul.mubr.f32.gmra.mrb[26].mxu0 %v883_v43  ;;  %v933_v16 = vand.u32 4294901760, %v4992_v23 }
 0x186   : > { %5650 = vst [vmem:[#allocation36_spill] sm:$0xff] %v4995_v30  ;;  %v5000_v5 = vand.u32 4294901760, %v506_v24  ;;  %3716 = vmatprep.mubr.f32.mxu1 %v875_v62  ;;  %3947 = vmatprep.mubr.f32.mxu0 %v893_v0  ;;  %v885_v7 = vand.u32 4294901760, %v884_v12  ;;  %v903_v34 = vand.u32 4294901760, %v4995_v30  ;;  %v915_v12 = vand.u32 4294901760, %v914_v13 }
 0x188   : > { %v5005_v31 = vsub.f32 %v506_v24, %v5000_v5  ;;  %v414_v41 = vpop.permute.xlu0 %413  ;;  %v904_v48 = vsub.f32 %v4995_v30, %v903_v34 }
 0x189   : > { %v510_v59 = vsel %vm443_vm1, %v414_v41, 0  ;;  %3717 = vmatmul.mubr.f32.gmra.mrb[26].mxu1 %v885_v7  ;;  %3948 = vmatmul.mubr.f32.gmra.mrb[28].mxu0 %v903_v34  ;;  %v934_v41 = vsub.f32 %v4992_v23, %v933_v16 }
 0x18a   : > { %5651 = vst [vmem:[#allocation37_spill] sm:$0xff] %v5005_v31  ;;  %v5010_v43 = vand.u32 4294901760, %v510_v59  ;;  %3719 = vmatprep.mubr.f32.mxu1 %v895_v57  ;;  %3950 = vmatprep.mubr.f32.mxu0 %v913_v29  ;;  %v905_v0 = vand.u32 4294901760, %v904_v48  ;;  %v923_v62 = vand.u32 4294901760, %v5005_v31 }
 0x18b   : > { %v416_v24 = vpop.permute.xlu1 %415  ;;  %v935_v34 = vand.u32 4294901760, %v934_v41 }
 0x18c   : > { %v5014_v28 = vsub.f32 %v510_v59, %v5010_v43  ;;  %v512_v61 = vsel %vm443_vm1, %v416_v24, 0  ;;  %v924_v30 = vsub.f32 %v5005_v31, %v923_v62 }
 0x18d   : > { %3720 = vmatmul.mubr.f32.gmra.mrb[28].mxu1 %v905_v0  ;;  %3951 = vmatmul.mubr.f32.gmra.mrb[30].mxu0 %v923_v62  ;;  %v5019_v7 = vand.u32 4294901760, %v512_v61 }
 0x18e   : > { %5652 = vst [vmem:[#allocation38_spill] sm:$0xff] %v5014_v28  ;;  %3722 = vmatprep.mubr.f32.mxu1 %v915_v12  ;;  %3953 = vmatprep.mubr.f32.mxu0 %v933_v16  ;;  %v925_v48 = vand.u32 4294901760, %v924_v30  ;;  %v943_v57 = vand.u32 4294901760, %v5014_v28 }
 0x18f   : > { %v5023_v29 = vsub.f32 %v512_v61, %v5019_v7 }
 0x190   : > { %v944_v13 = vsub.f32 %v5014_v28, %v943_v57 }
 0x191   : > { %5653 = vst [vmem:[#allocation39_spill] sm:$0xff] %v5023_v29  ;;  %3723 = vmatmul.mubr.f32.gmra.mrb[30].mxu1 %v925_v48  ;;  %3954 = vmatmul.mubr.f32.gmra.mrb[32].mxu0 %v943_v57  ;;  %v953_v59 = vand.u32 4294901760, %v5023_v29 }
 0x192   : > { %3725 = vmatprep.mubr.f32.mxu1 %v935_v34  ;;  %v945_v0 = vand.u32 4294901760, %v944_v13 }
 0x193   : > { %3956 = vmatprep.mubr.f32.mxu0 %v953_v59  ;;  %v954_v62 = vsub.f32 %v5023_v29, %v953_v59  ;;  %v420_v30 = vpop.permute.xlu1 %419 }
 0x194   : > { %v516_v12 = vsel %vm443_vm1, %v420_v30, 0 }
 0x195   : > { %3726 = vmatmul.mubr.f32.gmra.mrb[32].mxu1 %v945_v0  ;;  %v955_v16 = vand.u32 4294901760, %v954_v62  ;;  %v5029_v61 = vand.u32 4294901760, %v516_v12 }
 0x197   : > { %3728 = vmatprep.mubr.f32.mxu1 %v955_v16  ;;  %v5033_v57 = vsub.f32 %v516_v12, %v5029_v61 }
 0x199   : > { %5654 = vst [vmem:[#allocation40_spill] sm:$0xff] %v5033_v57 }
 0x19b   : > { %v424_v24 = vpop.permute.xlu1 %423 }
 0x19c   : > { %v520_v41 = vsel %vm443_vm1, %v424_v24, 0  ;;  %v973_v24 = vand.u32 4294901760, %v5033_v57 }
 0x19d   : > { %v5035_v34 = vand.u32 4294901760, %v520_v41 }
 0x19f   : > { %v5042_v16 = vsub.f32 %v520_v41, %v5035_v34  ;;  %v974_v41 = vsub.f32 %v5033_v57, %v973_v24 }
 0x1a1   : > { %5655 = vst [vmem:[#allocation41_spill] sm:$0xff] %v5042_v16  ;;  %v993_v31 = vand.u32 4294901760, %v5042_v16  ;;  %v975_v56 = vand.u32 4294901760, %v974_v41 }
 0x1a3   : > { %v428_v48 = vpop.permute.xlu1 %427  ;;  %v994_v57 = vsub.f32 %v5042_v16, %v993_v31 }
 0x1a4   : > { %v524_v13 = vsel %vm443_vm1, %v428_v48, 0 }
 0x1a5   : > { %v5044_v30 = vand.u32 4294901760, %v524_v13  ;;  %v995_v16 = vand.u32 4294901760, %v994_v57 }
 0x1af   : > { %v418_v59 = vpop.permute.xlu0 %417 }
 0x1b0   : > { %v514_v0 = vsel %vm443_vm1, %v418_v59, 0  ;;  %v5055_v59 = vsub.f32 %v524_v13, %v5044_v30 }
 0x1b1   : > { %v5039_v62 = vand.u32 4294901760, %v514_v0 }
 0x1b2   : > { %5657 = vst [vmem:[#allocation43_spill] sm:$0xff] %v5055_v59  ;;  %v1013_v17 = vand.u32 4294901760, %v5055_v59 }
 0x1b3   : > { %v5048_v29 = vsub.f32 %v514_v0, %v5039_v62  ;;  %v422_v12 = vpop.permute.xlu0 %421 }
 0x1b4   : > { %v518_v28 = vsel %vm443_vm1, %v422_v12, 0 }
 0x1b5   : > { %5656 = vst [vmem:[#allocation42_spill] sm:$0xff] %v5048_v29  ;;  %v5051_v23 = vand.u32 4294901760, %v518_v28  ;;  %v963_v48 = vand.u32 4294901760, %v5048_v29 }
 0x1b7   : > { %v5060_v6 = vsub.f32 %v518_v28, %v5051_v23  ;;  %3957 = vmatmul.mubr.f32.gmra.mrb[34].mxu0 %v963_v48  ;;  %v426_v0 = vpop.permute.xlu0 %425  ;;  %v964_v63 = vsub.f32 %v5048_v29, %v963_v48  ;;  %v1014_v29 = vsub.f32 %v5055_v59, %v1013_v17 }
 0x1b8   : > { %v522_v12 = vsel %vm443_vm1, %v426_v0, 0  ;;  %3959 = vmatprep.mubr.f32.mxu0 %v973_v24 }
 0x1b9   : > { %5658 = vst [vmem:[#allocation44_spill] sm:$0xff] %v5060_v6  ;;  %v5064_v22 = vand.u32 4294901760, %v522_v12  ;;  %v965_v42 = vand.u32 4294901760, %v964_v63  ;;  %v983_v13 = vand.u32 4294901760, %v5060_v6 }
 0x1bb   : > { %v5070_v28 = vsub.f32 %v522_v12, %v5064_v22  ;;  %3729 = vmatmul.mubr.f32.gmra.mrb[34].mxu1 %v965_v42  ;;  %3960 = vmatmul.mubr.f32.gmra.mrb[36].mxu0 %v983_v13  ;;  %v430_v18 = vpop.permute.xlu0 %429  ;;  %v984_v48 = vsub.f32 %v5060_v6, %v983_v13 }
 0x1bc   : > { %v526_v24 = vsel %vm443_vm1, %v430_v18, 0  ;;  %3731 = vmatprep.mubr.f32.mxu1 %v975_v56  ;;  %3962 = vmatprep.mubr.f32.mxu0 %v993_v31  ;;  %v1015_v31 = vand.u32 4294901760, %v1014_v29 }
 0x1bd   : > { %5659 = vst [vmem:[#allocation45_spill] sm:$0xff] %v5070_v28  ;;  %v5074_v63 = vand.u32 4294901760, %v526_v24  ;;  %v985_v0 = vand.u32 4294901760, %v984_v48  ;;  %v1003_v41 = vand.u32 4294901760, %v5070_v28 }
 0x1bf   : > { %v5079_v12 = vsub.f32 %v526_v24, %v5074_v63  ;;  %3732 = vmatmul.mubr.f32.gmra.mrb[36].mxu1 %v985_v0  ;;  %3963 = vmatmul.mubr.f32.gmra.mrb[38].mxu0 %v1003_v41  ;;  %v1004_v42 = vsub.f32 %v5070_v28, %v1003_v41 }
 0x1c0   : > { %3734 = vmatprep.mubr.f32.mxu1 %v995_v16  ;;  %3965 = vmatprep.mubr.f32.mxu0 %v1013_v17 }
 0x1c1   : > { %5660 = vst [vmem:[#allocation46_spill] sm:$0xff] %v5079_v12  ;;  %v1005_v18 = vand.u32 4294901760, %v1004_v42  ;;  %v1023_v56 = vand.u32 4294901760, %v5079_v12 }
 0x1c3   : > { %3735 = vmatmul.mubr.f32.gmra.mrb[38].mxu1 %v1005_v18  ;;  %3966 = vmatmul.mubr.f32.gmra.mrb[40].mxu0 %v1023_v56  ;;  %v1024_v13 = vsub.f32 %v5079_v12, %v1023_v56 }
 0x1c4   : > { %v432_v57 = vpop.permute.xlu1 %431  ;;  %3737 = vmatprep.mubr.f32.mxu1 %v1015_v31 }
 0x1c5   : > { %v528_v48 = vsel %vm443_vm1, %v432_v57, 0  ;;  %v1025_v24 = vand.u32 4294901760, %v1024_v13 }
 0x1c6   : > { %v5085_v59 = vand.u32 4294901760, %v528_v48 }
 0x1c7   : > { %3738 = vmatmul.mubr.f32.gmra.mrb[40].mxu1 %v1025_v24 }
 0x1c8   : > { %v5088_v0 = vsub.f32 %v528_v48, %v5085_v59  ;;  %v436_v17 = vpop.permute.xlu1 %435  ;;  %v434_v16 = vpop.permute.xlu0 %433 }
 0x1c9   : > { %v532_v41 = vsel %vm443_vm1, %v436_v17, 0  ;;  %v530_v29 = vsel %vm443_vm1, %v434_v16, 0 }
 0x1ca   : > { %5661 = vst [vmem:[#allocation47_spill] sm:$0xff] %v5088_v0  ;;  %v5092_v42 = vand.u32 4294901760, %v532_v41  ;;  %v5094_v18 = vand.u32 4294901760, %v530_v29  ;;  %v1033_v56 = vand.u32 4294901760, %v5088_v0 }
 0x1cc   : > { %v5098_v31 = vsub.f32 %v532_v41, %v5092_v42  ;;  %v5101_v13 = vsub.f32 %v530_v29, %v5094_v18  ;;  %v440_v57 = vpop.permute.xlu1 %439  ;;  %3968 = vmatprep.mubr.f32.mxu0 %v1033_v56  ;;  %v1034_v48 = vsub.f32 %v5088_v0, %v1033_v56 }
 0x1cd   : > { %v536_v24 = vsel %vm443_vm1, %v440_v57, 0 }
 0x1ce   : > { %5662 = vst [vmem:[#allocation48_spill] sm:$0xff] %v5098_v31  ;;  %v5105_v17 = vand.u32 4294901760, %v536_v24  ;;  %v1035_v16 = vand.u32 4294901760, %v1034_v48  ;;  %v1043_v12 = vand.u32 4294901760, %v5101_v13  ;;  %v1053_v28 = vand.u32 4294901760, %v5098_v31 }
 0x1cf   : > { %v438_v6 = vpop.permute.xlu0 %437 }
 0x1d0   : > { %v5110_v41 = vsub.f32 %v536_v24, %v5105_v17  ;;  %v534_v29 = vsel %vm443_vm1, %v438_v6, 0  ;;  %3740 = vmatprep.mubr.f32.mxu1 %v1035_v16  ;;  %3969 = vmatmul.mubr.f32.gmra.mrb[42].mxu0 %v1043_v12  ;;  %v1044_v9 = vsub.f32 %v5101_v13, %v1043_v12  ;;  %v1054_v56 = vsub.f32 %v5098_v31, %v1053_v28 }
 0x1d1   : > { %v5115_v57 = vand.u32 4294901760, %v534_v29  ;;  %3971 = vmatprep.mubr.f32.mxu0 %v1053_v28 }
 0x1d2   : > { %v1045_v48 = vand.u32 4294901760, %v1044_v9  ;;  %v1055_v0 = vand.u32 4294901760, %v1054_v56  ;;  %v1073_v53 = vand.u32 4294901760, %v5110_v41 }
 0x1d3   : > { %v5119_v47 = vsub.f32 %v534_v29, %v5115_v57 }
 0x1d4   : > { %3741 = vmatmul.mubr.f32.gmra.mrb[42].mxu1 %v1045_v48  ;;  %v1074_v24 = vsub.f32 %v5110_v41, %v1073_v53 }
 0x1d5   : > { %3743 = vmatprep.mubr.f32.mxu1 %v1055_v0  ;;  %v1063_v6 = vand.u32 4294901760, %v5119_v47 }
 0x1d6   : > { %v1075_v56 = vand.u32 4294901760, %v1074_v24 }
 0x1d7   : > { %3972 = vmatmul.mubr.f32.gmra.mrb[44].mxu0 %v1063_v6  ;;  %v442_v12 = vpop.permute.xlu0 %441  ;;  %v1064_v16 = vsub.f32 %v5119_v47, %v1063_v6 }
 0x1d8   : > { %v538_v31 = vsel %vm443_vm1, %v442_v12, 0  ;;  %3974 = vmatprep.mubr.f32.mxu0 %v1073_v53  ;;  %v5664_v53 = vld [vmem:[#allocation6_spill] sm:$0xff] }
 0x1d9   : > { %v5125_v9 = vand.u32 4294901760, %v538_v31  ;;  %v1065_v28 = vand.u32 4294901760, %v1064_v16 }
 0x1db   : > { %v5128_v29 = vsub.f32 %v538_v31, %v5125_v9  ;;  %3744 = vmatmul.mubr.f32.gmra.mrb[44].mxu1 %v1065_v28  ;;  %v5666_v31 = vld [vmem:[#allocation9_spill] sm:$0xff] }
 0x1dc   : > { %3746 = vmatprep.mubr.f32.mxu1 %v1075_v56 }
 0x1dd   : > { %v1083_v0 = vand.u32 4294901760, %v5128_v29 }
 0x1df   : > { %3975 = vmatmul.mubr.f32.gmra.mrb[46].mxu0 %v1083_v0  ;;  %v1084_v48 = vsub.f32 %v5128_v29, %v1083_v0 }
 0x1e0   : > { %3981 = vmatprep.mubr.f32.mxu0 %v4672_v45 }
 0x1e1   : > { %v1085_v6 = vand.u32 4294901760, %v1084_v48 }
 0x1e3   : > { %3747 = vmatmul.mubr.f32.gmra.mrb[46].mxu1 %v1085_v6  ;;  %3982 = vmatmul.mubr.f32.vlgmr.msra.gmra.mrb[0].mxu0 %v4683_v51 }
 0x1e4   : > { %3753 = vmatprep.mubr.f32.mxu1 %v4672_v45  ;;  %3984 = vmatprep.mubr.f32.mxu0 %v4739_v8 }
 0x1e5   : > { %4152 = vmatpush3.bf16.msra.mxu0 %v4646_v25  ;;  %v5663_v25 = vld [vmem:[#allocation5_spill] sm:$0xff] }
 0x1e7   : > { %3754 = vmatmul.mubr.f32.vlgmr.msra.gmra.mrb[0].mxu1 %v4683_v51  ;;  %3985 = vmatmul.mubr.f32.gmra.mrb[2].mxu0 %v4751_v15 }
 0x1e8   : > { %4140 = vmatpush3.bf16.msra.mxu1 %v4891_v19  ;;  %3756 = vmatprep.mubr.f32.mxu1 %v4739_v8  ;;  %v5665_v19 = vld [vmem:[#allocation7_spill] sm:$0xff] }
 0x1e9   : > { %3987 = vmatprep.mubr.f32.mxu0 %v4747_v14 }
 0x1eb   : > { %3757 = vmatmul.mubr.f32.gmra.mrb[2].mxu1 %v4751_v15  ;;  %3988 = vmatmul.mubr.f32.gmra.mrb[4].mxu0 %v4778_v50 }
 0x1ec   : > { %3759 = vmatprep.mubr.f32.mxu1 %v4747_v14  ;;  %3990 = vmatprep.mubr.f32.mxu0 %v4770_v39 }
 0x1ef   : > { %3760 = vmatmul.mubr.f32.gmra.mrb[4].mxu1 %v4778_v50  ;;  %3991 = vmatmul.mubr.f32.gmra.mrb[6].mxu0 %v4807_v11 }
 0x1f0   : > { %3762 = vmatprep.mubr.f32.mxu1 %v4770_v39  ;;  %3993 = vmatprep.mubr.f32.mxu0 %v4781_v54 }
 0x1f3   : > { %3763 = vmatmul.mubr.f32.gmra.mrb[6].mxu1 %v4807_v11  ;;  %3994 = vmatmul.mubr.f32.gmra.mrb[8].mxu0 %v4787_v58 }
 0x1f4   : > { %3765 = vmatprep.mubr.f32.mxu1 %v4781_v54  ;;  %3996 = vmatprep.mubr.f32.mxu0 %v4796_v1 }
 0x1f7   : > { %3766 = vmatmul.mubr.f32.gmra.mrb[8].mxu1 %v4787_v58  ;;  %3997 = vmatmul.mubr.f32.gmra.mrb[10].mxu0 %v4805_v10 }
 0x1f8   : > { %3768 = vmatprep.mubr.f32.mxu1 %v4796_v1  ;;  %3999 = vmatprep.mubr.f32.mxu0 %v4813_v20 }
 0x1fb   : > { %3769 = vmatmul.mubr.f32.gmra.mrb[10].mxu1 %v4805_v10  ;;  %4000 = vmatmul.mubr.f32.gmra.mrb[12].mxu0 %v4823_v26 }
 0x1fc   : > { %3771 = vmatprep.mubr.f32.mxu1 %v4813_v20  ;;  %4002 = vmatprep.mubr.f32.mxu0 %v4842_v46 }
 0x1ff   : > { %3772 = vmatmul.mubr.f32.gmra.mrb[12].mxu1 %v4823_v26  ;;  %4003 = vmatmul.mubr.f32.gmra.mrb[14].mxu0 %v4865_v37 }
 0x200   : > { %3774 = vmatprep.mubr.f32.mxu1 %v4842_v46  ;;  %4005 = vmatprep.mubr.f32.mxu0 %v4857_v27 }
 0x203   : > { %3775 = vmatmul.mubr.f32.gmra.mrb[14].mxu1 %v4865_v37  ;;  %4006 = vmatmul.mubr.f32.gmra.mrb[16].mxu0 %v4883_v2 }
 0x204   : > { %3777 = vmatprep.mubr.f32.mxu1 %v4857_v27  ;;  %4008 = vmatprep.mubr.f32.mxu0 %v4874_v44 }
 0x207   : > { %3778 = vmatmul.mubr.f32.gmra.mrb[16].mxu1 %v4883_v2  ;;  %4009 = vmatmul.mubr.f32.gmra.mrb[18].mxu0 %v4900_v60 }
 0x208   : > { %3780 = vmatprep.mubr.f32.mxu1 %v4874_v44  ;;  %4011 = vmatprep.mubr.f32.mxu0 %v4913_v4 }
 0x20b   : > { %3781 = vmatmul.mubr.f32.gmra.mrb[18].mxu1 %v4900_v60  ;;  %4012 = vmatmul.mubr.f32.gmra.mrb[20].mxu0 %v4930_v32 }
 0x20c   : > { %3783 = vmatprep.mubr.f32.mxu1 %v4913_v4  ;;  %4014 = vmatprep.mubr.f32.mxu0 %v4902_v40 }
 0x20f   : > { %3784 = vmatmul.mubr.f32.gmra.mrb[20].mxu1 %v4930_v32  ;;  %4015 = vmatmul.mubr.f32.gmra.mrb[22].mxu0 %v4940_v21 }
 0x210   : > { %3786 = vmatprep.mubr.f32.mxu1 %v4902_v40  ;;  %4017 = vmatprep.mubr.f32.mxu0 %v4911_v3 }
 0x213   : > { %3787 = vmatmul.mubr.f32.gmra.mrb[22].mxu1 %v4940_v21  ;;  %4018 = vmatmul.mubr.f32.gmra.mrb[24].mxu0 %v4956_v49 }
 0x214   : > { %3789 = vmatprep.mubr.f32.mxu1 %v4911_v3  ;;  %4020 = vmatprep.mubr.f32.mxu0 %v4928_v35 }
 0x217   : > { %3790 = vmatmul.mubr.f32.gmra.mrb[24].mxu1 %v4956_v49  ;;  %4021 = vmatmul.mubr.f32.gmra.mrb[26].mxu0 %v4972_v55 }
 0x218   : > { %3792 = vmatprep.mubr.f32.mxu1 %v4928_v35  ;;  %4023 = vmatprep.mubr.f32.mxu0 %v4947_v52 }
 0x21b   : > { %3793 = vmatmul.mubr.f32.gmra.mrb[26].mxu1 %v4972_v55  ;;  %4024 = vmatmul.mubr.f32.gmra.mrb[28].mxu0 %v4987_v36 }
 0x21c   : > { %3795 = vmatprep.mubr.f32.mxu1 %v4947_v52  ;;  %4026 = vmatprep.mubr.f32.mxu0 %v4959_v38 }
 0x21f   : > { %3796 = vmatmul.mubr.f32.gmra.mrb[28].mxu1 %v4987_v36  ;;  %4027 = vmatmul.mubr.f32.gmra.mrb[30].mxu0 %v5000_v5 }
 0x220   : > { %3798 = vmatprep.mubr.f32.mxu1 %v4959_v38  ;;  %4029 = vmatprep.mubr.f32.mxu0 %v4979_v33 }
 0x223   : > { %3799 = vmatmul.mubr.f32.gmra.mrb[30].mxu1 %v5000_v5  ;;  %4030 = vmatmul.mubr.f32.gmra.mrb[32].mxu0 %v5010_v43 }
 0x224   : > { %3801 = vmatprep.mubr.f32.mxu1 %v4979_v33  ;;  %4032 = vmatprep.mubr.f32.mxu0 %v5019_v7 }
 0x227   : > { %3802 = vmatmul.mubr.f32.gmra.mrb[32].mxu1 %v5010_v43  ;;  %4033 = vmatmul.mubr.f32.gmra.mrb[34].mxu0 %v5039_v62 }
 0x228   : > { %3804 = vmatprep.mubr.f32.mxu1 %v5019_v7  ;;  %4035 = vmatprep.mubr.f32.mxu0 %v5029_v61 }
 0x22b   : > { %3805 = vmatmul.mubr.f32.gmra.mrb[34].mxu1 %v5039_v62  ;;  %4036 = vmatmul.mubr.f32.gmra.mrb[36].mxu0 %v5051_v23 }
 0x22c   : > { %3807 = vmatprep.mubr.f32.mxu1 %v5029_v61  ;;  %4038 = vmatprep.mubr.f32.mxu0 %v5035_v34 }
 0x22f   : > { %3808 = vmatmul.mubr.f32.gmra.mrb[36].mxu1 %v5051_v23  ;;  %4039 = vmatmul.mubr.f32.gmra.mrb[38].mxu0 %v5064_v22 }
 0x230   : > { %3810 = vmatprep.mubr.f32.mxu1 %v5035_v34  ;;  %4041 = vmatprep.mubr.f32.mxu0 %v5044_v30 }
 0x233   : > { %3811 = vmatmul.mubr.f32.gmra.mrb[38].mxu1 %v5064_v22  ;;  %4042 = vmatmul.mubr.f32.gmra.mrb[40].mxu0 %v5074_v63 }
 0x234   : > { %3813 = vmatprep.mubr.f32.mxu1 %v5044_v30  ;;  %4044 = vmatprep.mubr.f32.mxu0 %v5085_v59 }
 0x237   : > { %3814 = vmatmul.mubr.f32.gmra.mrb[40].mxu1 %v5074_v63  ;;  %4045 = vmatmul.mubr.f32.gmra.mrb[42].mxu0 %v5094_v18 }
 0x238   : > { %3816 = vmatprep.mubr.f32.mxu1 %v5085_v59  ;;  %4047 = vmatprep.mubr.f32.mxu0 %v5092_v42 }
 0x23b   : > { %3817 = vmatmul.mubr.f32.gmra.mrb[42].mxu1 %v5094_v18  ;;  %4048 = vmatmul.mubr.f32.gmra.mrb[44].mxu0 %v5115_v57 }
 0x23c   : > { %3819 = vmatprep.mubr.f32.mxu1 %v5092_v42  ;;  %4050 = vmatprep.mubr.f32.mxu0 %v5105_v17 }
 0x23f   : > { %3820 = vmatmul.mubr.f32.gmra.mrb[44].mxu1 %v5115_v57  ;;  %4051 = vmatmul.mubr.f32.gmra.mrb[46].mxu0 %v5125_v9 }
 0x240   : > { %3822 = vmatprep.mubr.f32.mxu1 %v5105_v17  ;;  %4057 = vmatprep.mubr.f32.mxu0 %v4672_v45  ;;  %v5667_v45 = vld [vmem:[#allocation8_spill] sm:$0xff] }
 0x243   : > { %3823 = vmatmul.mubr.f32.gmra.mrb[46].mxu1 %v5125_v9  ;;  %4058 = vmatmul.mubr.f32.vlgmr.msra.gmra.mrb[0].mxu0 %v4683_v51  ;;  %v5668_v51 = vld [vmem:[#allocation11_spill] sm:$0xff] }
 0x244   : > { %3829 = vmatprep.mubr.f32.mxu1 %v5663_v25  ;;  %4060 = vmatprep.mubr.f32.mxu0 %v4739_v8  ;;  %v5669_v8 = vld [vmem:[#allocation10_spill] sm:$0xff] }
 0x247   : > { %3830 = vmatmul.mubr.f32.vlgmr.msra.gmra.mrb[0].mxu1 %v5664_v53  ;;  %4061 = vmatmul.mubr.f32.gmra.mrb[2].mxu0 %v4751_v15  ;;  %v5670_v15 = vld [vmem:[#allocation15_spill] sm:$0xff] }
 0x248   : > { %3832 = vmatprep.mubr.f32.mxu1 %v5665_v19  ;;  %4063 = vmatprep.mubr.f32.mxu0 %v4747_v14  ;;  %v5671_v14 = vld [vmem:[#allocation12_spill] sm:$0xff] }
 0x24b   : > { %3833 = vmatmul.mubr.f32.gmra.mrb[2].mxu1 %v5666_v31  ;;  %4064 = vmatmul.mubr.f32.gmra.mrb[4].mxu0 %v4778_v50  ;;  %v5672_v50 = vld [vmem:[#allocation13_spill] sm:$0xff] }
 0x24c   : > { %3835 = vmatprep.mubr.f32.mxu1 %v5667_v45  ;;  %4066 = vmatprep.mubr.f32.mxu0 %v4770_v39  ;;  %v5673_v39 = vld [vmem:[#allocation14_spill] sm:$0xff] }
 0x24f   : > { %3836 = vmatmul.mubr.f32.gmra.mrb[4].mxu1 %v5668_v51  ;;  %4067 = vmatmul.mubr.f32.gmra.mrb[6].mxu0 %v4807_v11  ;;  %v5674_v11 = vld [vmem:[#allocation16_spill] sm:$0xff] }
 0x250   : > { %3838 = vmatprep.mubr.f32.mxu1 %v5669_v8  ;;  %4069 = vmatprep.mubr.f32.mxu0 %v4781_v54  ;;  %v5675_v54 = vld [vmem:[#allocation17_spill] sm:$0xff] }
 0x253   : > { %3839 = vmatmul.mubr.f32.gmra.mrb[6].mxu1 %v5670_v15  ;;  %4070 = vmatmul.mubr.f32.gmra.mrb[8].mxu0 %v4787_v58  ;;  %v5676_v58 = vld [vmem:[#allocation18_spill] sm:$0xff] }
 0x254   : > { %3841 = vmatprep.mubr.f32.mxu1 %v5671_v14  ;;  %4072 = vmatprep.mubr.f32.mxu0 %v4796_v1  ;;  %v5677_v1 = vld [vmem:[#allocation19_spill] sm:$0xff] }
 0x257   : > { %3842 = vmatmul.mubr.f32.gmra.mrb[8].mxu1 %v5672_v50  ;;  %4073 = vmatmul.mubr.f32.gmra.mrb[10].mxu0 %v4805_v10  ;;  %v5678_v10 = vld [vmem:[#allocation21_spill] sm:$0xff] }
 0x258   : > { %3844 = vmatprep.mubr.f32.mxu1 %v5673_v39  ;;  %4075 = vmatprep.mubr.f32.mxu0 %v4813_v20  ;;  %v5679_v20 = vld [vmem:[#allocation20_spill] sm:$0xff] }
 0x25b   : > { %3845 = vmatmul.mubr.f32.gmra.mrb[10].mxu1 %v5674_v11  ;;  %4076 = vmatmul.mubr.f32.gmra.mrb[12].mxu0 %v4823_v26  ;;  %v5680_v26 = vld [vmem:[#allocation23_spill] sm:$0xff] }
 0x25c   : > { %3847 = vmatprep.mubr.f32.mxu1 %v5675_v54  ;;  %4078 = vmatprep.mubr.f32.mxu0 %v4842_v46  ;;  %v5681_v46 = vld [vmem:[#allocation22_spill] sm:$0xff] }
 0x25f   : > { %3848 = vmatmul.mubr.f32.gmra.mrb[12].mxu1 %v5676_v58  ;;  %4079 = vmatmul.mubr.f32.gmra.mrb[14].mxu0 %v4865_v37  ;;  %v5682_v37 = vld [vmem:[#allocation24_spill] sm:$0xff] }
 0x260   : > { %3850 = vmatprep.mubr.f32.mxu1 %v5677_v1  ;;  %4081 = vmatprep.mubr.f32.mxu0 %v4857_v27  ;;  %v5683_v27 = vld [vmem:[#allocation26_spill] sm:$0xff] }
 0x263   : > { %3851 = vmatmul.mubr.f32.gmra.mrb[14].mxu1 %v5678_v10  ;;  %4082 = vmatmul.mubr.f32.gmra.mrb[16].mxu0 %v4883_v2  ;;  %v5684_v2 = vld [vmem:[#allocation28_spill] sm:$0xff] }
 0x264   : > { %3853 = vmatprep.mubr.f32.mxu1 %v5679_v20  ;;  %4084 = vmatprep.mubr.f32.mxu0 %v4874_v44  ;;  %v5685_v44 = vld [vmem:[#allocation25_spill] sm:$0xff] }
 0x267   : > { %3854 = vmatmul.mubr.f32.gmra.mrb[16].mxu1 %v5680_v26  ;;  %4085 = vmatmul.mubr.f32.gmra.mrb[18].mxu0 %v4900_v60  ;;  %v5686_v60 = vld [vmem:[#allocation30_spill] sm:$0xff] }
 0x268   : > { %3856 = vmatprep.mubr.f32.mxu1 %v5681_v46  ;;  %4087 = vmatprep.mubr.f32.mxu0 %v4913_v4  ;;  %v5687_v4 = vld [vmem:[#allocation27_spill] sm:$0xff] }
 0x26b   : > { %3857 = vmatmul.mubr.f32.gmra.mrb[18].mxu1 %v5682_v37  ;;  %4088 = vmatmul.mubr.f32.gmra.mrb[20].mxu0 %v4930_v32  ;;  %v5688_v32 = vld [vmem:[#allocation32_spill] sm:$0xff] }
 0x26c   : > { %3859 = vmatprep.mubr.f32.mxu1 %v5683_v27  ;;  %4090 = vmatprep.mubr.f32.mxu0 %v4902_v40  ;;  %v5689_v40 = vld [vmem:[#allocation29_spill] sm:$0xff] }
 0x26f   : > { %3860 = vmatmul.mubr.f32.gmra.mrb[20].mxu1 %v5684_v2  ;;  %4091 = vmatmul.mubr.f32.gmra.mrb[22].mxu0 %v4940_v21  ;;  %v5690_v21 = vld [vmem:[#allocation34_spill] sm:$0xff] }
 0x270   : > { %3862 = vmatprep.mubr.f32.mxu1 %v5685_v44  ;;  %4093 = vmatprep.mubr.f32.mxu0 %v4911_v3  ;;  %v5691_v3 = vld [vmem:[#allocation31_spill] sm:$0xff] }
 0x273   : > { %3863 = vmatmul.mubr.f32.gmra.mrb[22].mxu1 %v5686_v60  ;;  %4094 = vmatmul.mubr.f32.gmra.mrb[24].mxu0 %v4956_v49  ;;  %v5692_v49 = vld [vmem:[#allocation36_spill] sm:$0xff] }
 0x274   : > { %3865 = vmatprep.mubr.f32.mxu1 %v5687_v4  ;;  %4096 = vmatprep.mubr.f32.mxu0 %v4928_v35  ;;  %v5693_v35 = vld [vmem:[#allocation33_spill] sm:$0xff] }
 0x277   : > { %3866 = vmatmul.mubr.f32.gmra.mrb[24].mxu1 %v5688_v32  ;;  %4097 = vmatmul.mubr.f32.gmra.mrb[26].mxu0 %v4972_v55  ;;  %v5694_v55 = vld [vmem:[#allocation37_spill] sm:$0xff] }
 0x278   : > { %3868 = vmatprep.mubr.f32.mxu1 %v5689_v40  ;;  %4099 = vmatprep.mubr.f32.mxu0 %v4947_v52  ;;  %v5695_v52 = vld [vmem:[#allocation35_spill] sm:$0xff] }
 0x27b   : > { %3869 = vmatmul.mubr.f32.gmra.mrb[26].mxu1 %v5690_v21  ;;  %4100 = vmatmul.mubr.f32.gmra.mrb[28].mxu0 %v4987_v36  ;;  %v5696_v36 = vld [vmem:[#allocation38_spill] sm:$0xff] }
 0x27c   : > { %3871 = vmatprep.mubr.f32.mxu1 %v5691_v3  ;;  %4102 = vmatprep.mubr.f32.mxu0 %v4959_v38  ;;  %v5697_v38 = vld [vmem:[#allocation39_spill] sm:$0xff] }
 0x27f   : > { %3872 = vmatmul.mubr.f32.gmra.mrb[28].mxu1 %v5692_v49  ;;  %4103 = vmatmul.mubr.f32.gmra.mrb[30].mxu0 %v5000_v5  ;;  %v5698_v5 = vld [vmem:[#allocation42_spill] sm:$0xff] }
 0x280   : > { %3874 = vmatprep.mubr.f32.mxu1 %v5693_v35  ;;  %4105 = vmatprep.mubr.f32.mxu0 %v4979_v33  ;;  %v5699_v33 = vld [vmem:[#allocation40_spill] sm:$0xff] }
 0x283   : > { %3875 = vmatmul.mubr.f32.gmra.mrb[30].mxu1 %v5694_v55  ;;  %4106 = vmatmul.mubr.f32.gmra.mrb[32].mxu0 %v5010_v43  ;;  %v5700_v43 = vld [vmem:[#allocation44_spill] sm:$0xff] }
 0x284   : > { %3877 = vmatprep.mubr.f32.mxu1 %v5695_v52  ;;  %4108 = vmatprep.mubr.f32.mxu0 %v5019_v7  ;;  %v5701_v7 = vld [vmem:[#allocation41_spill] sm:$0xff] }
 0x287   : > { %3878 = vmatmul.mubr.f32.gmra.mrb[32].mxu1 %v5696_v36  ;;  %4109 = vmatmul.mubr.f32.gmra.mrb[34].mxu0 %v5039_v62  ;;  %v5702_v62 = vld [vmem:[#allocation45_spill] sm:$0xff] }
 0x288   : > { %3880 = vmatprep.mubr.f32.mxu1 %v5697_v38  ;;  %4111 = vmatprep.mubr.f32.mxu0 %v5029_v61  ;;  %v5703_v61 = vld [vmem:[#allocation43_spill] sm:$0xff] }
 0x28b   : > { %3881 = vmatmul.mubr.f32.gmra.mrb[34].mxu1 %v5698_v5  ;;  %4112 = vmatmul.mubr.f32.gmra.mrb[36].mxu0 %v5051_v23  ;;  %v5704_v23 = vld [vmem:[#allocation46_spill] sm:$0xff] }
 0x28c   : > { %3883 = vmatprep.mubr.f32.mxu1 %v5699_v33  ;;  %4114 = vmatprep.mubr.f32.mxu0 %v5035_v34  ;;  %v5705_v34 = vld [vmem:[#allocation47_spill] sm:$0xff] }
 0x28f   : > { %3884 = vmatmul.mubr.f32.gmra.mrb[36].mxu1 %v5700_v43  ;;  %4115 = vmatmul.mubr.f32.gmra.mrb[38].mxu0 %v5064_v22  ;;  %v5706_v22 = vld [vmem:[#allocation48_spill] sm:$0xff] }
 0x290   : > { %3886 = vmatprep.mubr.f32.mxu1 %v5701_v7  ;;  %4117 = vmatprep.mubr.f32.mxu0 %v5044_v30  ;;  %v3027_v30 = vlaneseq }
 0x293   : > { %3887 = vmatmul.mubr.f32.gmra.mrb[38].mxu1 %v5702_v62  ;;  %4118 = vmatmul.mubr.f32.gmra.mrb[40].mxu0 %v5074_v63 }
 0x294   : > { %3889 = vmatprep.mubr.f32.mxu1 %v5703_v61  ;;  %4120 = vmatprep.mubr.f32.mxu0 %v5085_v59  ;;  %v5326_v59 = vshrl.u32 %v3027_v30, 7 }
 0x296   : > { %v5330_v63 = vsub.s32 0, %v5326_v59  ;;  %v5358_v8 = vsub.s32 3, %v5326_v59  ;;  %v5367_v20 = vsub.s32 4, %v5326_v59  ;;  %v5376_v40 = vsub.s32 5, %v5326_v59 }
 0x297   : > { %3890 = vmatmul.mubr.f32.gmra.mrb[40].mxu1 %v5704_v23  ;;  %4121 = vmatmul.mubr.f32.gmra.mrb[42].mxu0 %v5094_v18  ;;  %v5335_v18 = vld [vmem:[%s5571_s2] sm:$0xff]  ;;  %v5385_v33 = vsub.s32 6, %v5326_v59 }
 0x298   : > { %3892 = vmatprep.mubr.f32.mxu1 %v5705_v34  ;;  %4123 = vmatprep.mubr.f32.mxu0 %v5092_v42  ;;  %v3057_v10 = vrot.slane %v5335_v18, %v5358_v8  ;;  %v3066_v32 = vrot.slane %v5335_v18, %v5367_v20  ;;  %v3075_v5 = vrot.slane %v5335_v18, %v5376_v40 }
 0x29b   : > { %3893 = vmatmul.mubr.f32.gmra.mrb[42].mxu1 %v5101_v13  ;;  %4124 = vmatmul.mubr.f32.gmra.mrb[44].mxu0 %v5115_v57  ;;  %v3030_v13 = vrot.slane %v5335_v18, %v5330_v63 }
 0x29c   : > { %3895 = vmatprep.mubr.f32.mxu1 %v5706_v22  ;;  %4126 = vmatprep.mubr.f32.mxu0 %v5105_v17  ;;  %v5342_v17 = vsub.s32 1, %v5326_v59 }
 0x29e   : > { %v3039_v56 = vrot.slane %v5335_v18, %v5342_v17 }
 0x29f   : > { %3896 = vmatmul.mubr.f32.gmra.mrb[44].mxu1 %v5119_v47  ;;  %4127 = vmatmul.mubr.f32.gmra.mrb[46].mxu0 %v5125_v9 }
 0x2a0   : > { %3898 = vmatprep.mubr.f32.mxu1 %v5110_v41 }
 0x2a3   : > { %3899 = vmatmul.mubr.f32.gmra.mrb[46].mxu1 %v5128_v29  ;;  %v5347_v29 = vsub.s32 2, %v5326_v59 }
 0x2a5   : > { %v3048_v51 = vrot.slane %v5335_v18, %v5347_v29 }
 0x316   : > { %v4059_v42 = vpop.f32.mrb[0].mxu0 }
 0x317   : > { %v2738_v47 = vpop.f32.mrb[1].mxu0 }
 0x31a   : > { %v3831_v41 = vpop.f32.mrb[0].mxu1  ;;  %v4062_v57 = vpop.f32.mrb[2].mxu0 }
 0x31b   : > { %v4153_v24 = vadd.f32 %v4059_v42, %v3831_v41  ;;  %v1526_v12 = vpop.f32.mrb[1].mxu1  ;;  %v2750_v16 = vpop.f32.mrb[3].mxu0  ;;  %v3084_v42 = vrot.slane %v5335_v18, %v5385_v33 }
 0x31c   : > { %v4154_v9 = vadd.f32 %v2738_v47, %v1526_v12  ;;  %v5394_v47 = vsub.s32 7, %v5326_v59 }
 0x31d   : > { %v3032_v28 = vadd.f32 %v4153_v24, %v3030_v13 }
 0x31e   : > { %v3031_v0 = vadd.f32 %v4154_v9, %v3030_v13  ;;  %v3834_v48 = vpop.f32.mrb[2].mxu1  ;;  %v4065_v6 = vpop.f32.mrb[4].mxu0 }
 0x31f   : > { %3035 = vst.msk [vmem:[%s5349_s8 + $0x8] sm:$0xff] %vm3033_vm4, %v3032_v28  ;;  %v4155_v25 = vadd.f32 %v4062_v57, %v3834_v48  ;;  %v1540_v53 = vpop.f32.mrb[3].mxu1  ;;  %v2762_v19 = vpop.f32.mrb[5].mxu0 }
 0x320   : > { %3034 = vst.msk [vmem:[%s5349_s8] sm:$0xff] %vm3033_vm4, %v3031_v0  ;;  %v4156_v31 = vadd.f32 %v2750_v16, %v1540_v53 }
 0x321   : > { %v3041_v45 = vadd.f32 %v4155_v25, %v3039_v56 }
 0x322   : > { %v3040_v15 = vadd.f32 %v4156_v31, %v3039_v56  ;;  %v3837_v14 = vpop.f32.mrb[4].mxu1  ;;  %v4068_v50 = vpop.f32.mrb[6].mxu0  ;;  %v3093_v56 = vrot.slane %v5335_v18, %v5394_v47 }
 0x323   : > { %3325 = vst.msk [vmem:[%s5349_s8 + $0x18] sm:$0xff] %vm3033_vm4, %v3041_v45  ;;  %v4157_v39 = vadd.f32 %v4065_v6, %v3837_v14  ;;  %v1554_v11 = vpop.f32.mrb[5].mxu1  ;;  %v2774_v54 = vpop.f32.mrb[7].mxu0  ;;  %v5405_v6 = vld [vmem:[%s5571_s2 + $0x8] sm:$0xff] }
 0x324   : > { %3324 = vst.msk [vmem:[%s5349_s8 + $0x10] sm:$0xff] %vm3033_vm4, %v3040_v15  ;;  %v4158_v58 = vadd.f32 %v2762_v19, %v1554_v11  ;;  %v3102_v18 = vrot.slane %v5405_v6, %v5330_v63 }
 0x325   : > { %v3050_v1 = vadd.f32 %v4157_v39, %v3048_v51 }
 0x326   : > { %v3049_v26 = vadd.f32 %v4158_v58, %v3048_v51  ;;  %v3840_v46 = vpop.f32.mrb[6].mxu1  ;;  %v4071_v37 = vpop.f32.mrb[8].mxu0 }
 0x327   : > { %3327 = vst.msk [vmem:[%s5349_s8 + $0x28] sm:$0xff] %vm3033_vm4, %v3050_v1  ;;  %v4159_v27 = vadd.f32 %v4068_v50, %v3840_v46  ;;  %v1568_v2 = vpop.f32.mrb[7].mxu1  ;;  %v2786_v44 = vpop.f32.mrb[9].mxu0  ;;  %v3111_v1 = vrot.slane %v5405_v6, %v5342_v17 }
 0x328   : > { %3326 = vst.msk [vmem:[%s5349_s8 + $0x20] sm:$0xff] %vm3033_vm4, %v3049_v26  ;;  %v4160_v60 = vadd.f32 %v2774_v54, %v1568_v2 }
 0x329   : > { %v3059_v4 = vadd.f32 %v4159_v27, %v3057_v10 }
 0x32a   : > { %v3058_v21 = vadd.f32 %v4160_v60, %v3057_v10  ;;  %v3843_v3 = vpop.f32.mrb[8].mxu1  ;;  %v4074_v49 = vpop.f32.mrb[10].mxu0 }
 0x32b   : > { %3329 = vst.msk [vmem:[%s5349_s8 + $0x38] sm:$0xff] %vm3033_vm4, %v3059_v4  ;;  %v4161_v35 = vadd.f32 %v4071_v37, %v3843_v3  ;;  %v1582_v55 = vpop.f32.mrb[9].mxu1  ;;  %v2798_v52 = vpop.f32.mrb[11].mxu0  ;;  %v3120_v4 = vrot.slane %v5405_v6, %v5347_v29 }
 0x32c   : > { %3328 = vst.msk [vmem:[%s5349_s8 + $0x30] sm:$0xff] %vm3033_vm4, %v3058_v21  ;;  %v4162_v36 = vadd.f32 %v2786_v44, %v1582_v55 }
 0x32d   : > { %v3068_v38 = vadd.f32 %v4161_v35, %v3066_v32 }
 0x32e   : > { %v3067_v43 = vadd.f32 %v4162_v36, %v3066_v32  ;;  %v3846_v7 = vpop.f32.mrb[10].mxu1  ;;  %v4077_v62 = vpop.f32.mrb[12].mxu0 }
 0x32f   : > { %3331 = vst.msk [vmem:[%s5349_s8 + $0x48] sm:$0xff] %vm3033_vm4, %v3068_v38  ;;  %v4163_v61 = vadd.f32 %v4074_v49, %v3846_v7  ;;  %v1596_v23 = vpop.f32.mrb[11].mxu1  ;;  %v2810_v34 = vpop.f32.mrb[13].mxu0  ;;  %v3129_v38 = vrot.slane %v5405_v6, %v5358_v8 }
 0x330   : > { %3330 = vst.msk [vmem:[%s5349_s8 + $0x40] sm:$0xff] %vm3033_vm4, %v3067_v43  ;;  %v4164_v22 = vadd.f32 %v2798_v52, %v1596_v23 }
 0x331   : > { %v3077_v30 = vadd.f32 %v4163_v61, %v3075_v5 }
 0x332   : > { %v3076_v13 = vadd.f32 %v4164_v22, %v3075_v5  ;;  %v3849_v41 = vpop.f32.mrb[12].mxu1  ;;  %v4080_v57 = vpop.f32.mrb[14].mxu0 }
 0x333   : > { %3333 = vst.msk [vmem:[%s5349_s8 + $0x58] sm:$0xff] %vm3033_vm4, %v3077_v30  ;;  %v4165_v24 = vadd.f32 %v4077_v62, %v3849_v41  ;;  %v1610_v12 = vpop.f32.mrb[13].mxu1  ;;  %v2822_v16 = vpop.f32.mrb[15].mxu0  ;;  %v3138_v30 = vrot.slane %v5405_v6, %v5367_v20 }
 0x334   : > { %3332 = vst.msk [vmem:[%s5349_s8 + $0x50] sm:$0xff] %vm3033_vm4, %v3076_v13  ;;  %v4166_v9 = vadd.f32 %v2810_v34, %v1610_v12 }
 0x335   : > { %v3086_v28 = vadd.f32 %v4165_v24, %v3084_v42 }
 0x336   : > { %v3085_v59 = vadd.f32 %v4166_v9, %v3084_v42  ;;  %v3852_v0 = vpop.f32.mrb[14].mxu1  ;;  %v4083_v48 = vpop.f32.mrb[16].mxu0 }
 0x337   : > { %3335 = vst.msk [vmem:[%s5349_s8 + $0x68] sm:$0xff] %vm3033_vm4, %v3086_v28  ;;  %v4167_v25 = vadd.f32 %v4080_v57, %v3852_v0  ;;  %v1624_v53 = vpop.f32.mrb[15].mxu1  ;;  %v2834_v19 = vpop.f32.mrb[17].mxu0  ;;  %v3147_v28 = vrot.slane %v5405_v6, %v5376_v40 }
 0x338   : > { %3334 = vst.msk [vmem:[%s5349_s8 + $0x60] sm:$0xff] %vm3033_vm4, %v3085_v59  ;;  %v4168_v31 = vadd.f32 %v2822_v16, %v1624_v53 }
 0x339   : > { %v3095_v45 = vadd.f32 %v4167_v25, %v3093_v56 }
 0x33a   : > { %v3094_v51 = vadd.f32 %v4168_v31, %v3093_v56  ;;  %v3855_v15 = vpop.f32.mrb[16].mxu1  ;;  %v4086_v14 = vpop.f32.mrb[18].mxu0 }
 0x33b   : > { %3337 = vst.msk [vmem:[%s5349_s8 + $0x78] sm:$0xff] %vm3033_vm4, %v3095_v45  ;;  %v4169_v50 = vadd.f32 %v4083_v48, %v3855_v15  ;;  %v1638_v39 = vpop.f32.mrb[17].mxu1  ;;  %v2846_v11 = vpop.f32.mrb[19].mxu0  ;;  %v3156_v45 = vrot.slane %v5405_v6, %v5385_v33 }
 0x33c   : > { %3336 = vst.msk [vmem:[%s5349_s8 + $0x70] sm:$0xff] %vm3033_vm4, %v3094_v51  ;;  %v4170_v54 = vadd.f32 %v2834_v19, %v1638_v39 }
 0x33d   : > { %v3104_v58 = vadd.f32 %v4169_v50, %v3102_v18 }
 0x33e   : > { %v3103_v10 = vadd.f32 %v4170_v54, %v3102_v18  ;;  %v3858_v26 = vpop.f32.mrb[18].mxu1  ;;  %v4089_v46 = vpop.f32.mrb[20].mxu0 }
 0x33f   : > { %3339 = vst.msk [vmem:[%s5349_s8 + $0x88] sm:$0xff] %vm3033_vm4, %v3104_v58  ;;  %v4171_v37 = vadd.f32 %v4086_v14, %v3858_v26  ;;  %v1652_v27 = vpop.f32.mrb[19].mxu1  ;;  %v2858_v2 = vpop.f32.mrb[21].mxu0  ;;  %v3165_v58 = vrot.slane %v5405_v6, %v5394_v47 }
 0x340   : > { %3338 = vst.msk [vmem:[%s5349_s8 + $0x80] sm:$0xff] %vm3033_vm4, %v3103_v10  ;;  %v4172_v44 = vadd.f32 %v2846_v11, %v1652_v27 }
 0x341   : > { %v3113_v60 = vadd.f32 %v4171_v37, %v3111_v1 }
 0x342   : > { %v3112_v32 = vadd.f32 %v4172_v44, %v3111_v1  ;;  %v3861_v21 = vpop.f32.mrb[20].mxu1  ;;  %v4092_v3 = vpop.f32.mrb[22].mxu0 }
 0x343   : > { %3341 = vst.msk [vmem:[%s5349_s8 + $0x98] sm:$0xff] %vm3033_vm4, %v3113_v60  ;;  %v4173_v49 = vadd.f32 %v4089_v46, %v3861_v21  ;;  %v1666_v35 = vpop.f32.mrb[21].mxu1  ;;  %v2870_v55 = vpop.f32.mrb[23].mxu0  ;;  %v5458_v46 = vld [vmem:[%s5571_s2 + $0x10] sm:$0xff] }
 0x344   : > { %3340 = vst.msk [vmem:[%s5349_s8 + $0x90] sm:$0xff] %vm3033_vm4, %v3112_v32  ;;  %v4174_v52 = vadd.f32 %v2858_v2, %v1666_v35  ;;  %v3174_v6 = vrot.slane %v5458_v46, %v5330_v63 }
 0x345   : > { %v3122_v36 = vadd.f32 %v4173_v49, %v3120_v4 }
 0x346   : > { %v3121_v5 = vadd.f32 %v4174_v52, %v3120_v4  ;;  %v3864_v43 = vpop.f32.mrb[22].mxu1  ;;  %v4095_v7 = vpop.f32.mrb[24].mxu0 }
 0x347   : > { %3343 = vst.msk [vmem:[%s5349_s8 + $0xa8] sm:$0xff] %vm3033_vm4, %v3122_v36  ;;  %v4175_v62 = vadd.f32 %v4092_v3, %v3864_v43  ;;  %v1680_v61 = vpop.f32.mrb[23].mxu1  ;;  %v2882_v23 = vpop.f32.mrb[25].mxu0  ;;  %v3183_v36 = vrot.slane %v5458_v46, %v5342_v17 }
 0x348   : > { %3342 = vst.msk [vmem:[%s5349_s8 + $0xa0] sm:$0xff] %vm3033_vm4, %v3121_v5  ;;  %v4176_v34 = vadd.f32 %v2870_v55, %v1680_v61 }
 0x349   : > { %v3131_v22 = vadd.f32 %v4175_v62, %v3129_v38 }
 0x34a   : > { %v3130_v42 = vadd.f32 %v4176_v34, %v3129_v38  ;;  %v3867_v13 = vpop.f32.mrb[24].mxu1  ;;  %v4098_v41 = vpop.f32.mrb[26].mxu0  ;;  %v3192_v34 = vrot.slane %v5458_v46, %v5347_v29 }
 0x34b   : > { %3345 = vst.msk [vmem:[%s5349_s8 + $0xb8] sm:$0xff] %vm3033_vm4, %v3131_v22  ;;  %v4177_v57 = vadd.f32 %v4095_v7, %v3867_v13  ;;  %v1694_v24 = vpop.f32.mrb[25].mxu1  ;;  %v2894_v12 = vpop.f32.mrb[27].mxu0 }
 0x34c   : > { %3344 = vst.msk [vmem:[%s5349_s8 + $0xb0] sm:$0xff] %vm3033_vm4, %v3130_v42  ;;  %v4178_v16 = vadd.f32 %v2882_v23, %v1694_v24 }
 0x34d   : > { %v3140_v9 = vadd.f32 %v4177_v57, %v3138_v30 }
 0x34e   : > { %v3139_v56 = vadd.f32 %v4178_v16, %v3138_v30  ;;  %v3870_v59 = vpop.f32.mrb[26].mxu1  ;;  %v4101_v0 = vpop.f32.mrb[28].mxu0 }
 0x34f   : > { %3347 = vst.msk [vmem:[%s5349_s8 + $0xc8] sm:$0xff] %vm3033_vm4, %v3140_v9  ;;  %v4179_v48 = vadd.f32 %v4098_v41, %v3870_v59  ;;  %v1708_v25 = vpop.f32.mrb[27].mxu1  ;;  %v2906_v53 = vpop.f32.mrb[29].mxu0 }
 0x350   : > { %3346 = vst.msk [vmem:[%s5349_s8 + $0xc0] sm:$0xff] %vm3033_vm4, %v3139_v56  ;;  %v4180_v19 = vadd.f32 %v2894_v12, %v1708_v25  ;;  %v3201_v12 = vrot.slane %v5458_v46, %v5358_v8  ;;  %v3210_v25 = vrot.slane %v5458_v46, %v5367_v20 }
 0x351   : > { %v3149_v31 = vadd.f32 %v4179_v48, %v3147_v28 }
 0x352   : > { %v3148_v18 = vadd.f32 %v4180_v19, %v3147_v28  ;;  %v3873_v51 = vpop.f32.mrb[28].mxu1  ;;  %v4104_v15 = vpop.f32.mrb[30].mxu0 }
 0x353   : > { %3349 = vst.msk [vmem:[%s5349_s8 + $0xd8] sm:$0xff] %vm3033_vm4, %v3149_v31  ;;  %v4181_v14 = vadd.f32 %v4101_v0, %v3873_v51  ;;  %v1722_v50 = vpop.f32.mrb[29].mxu1  ;;  %v2918_v39 = vpop.f32.mrb[31].mxu0 }
 0x354   : > { %3348 = vst.msk [vmem:[%s5349_s8 + $0xd0] sm:$0xff] %vm3033_vm4, %v3148_v18  ;;  %v4182_v11 = vadd.f32 %v2906_v53, %v1722_v50 }
 0x355   : > { %v3158_v54 = vadd.f32 %v4181_v14, %v3156_v45  ;;  %v3219_v14 = vrot.slane %v5458_v46, %v5376_v40 }
 0x356   : > { %v3157_v1 = vadd.f32 %v4182_v11, %v3156_v45  ;;  %v3876_v10 = vpop.f32.mrb[30].mxu1  ;;  %v4107_v26 = vpop.f32.mrb[32].mxu0 }
 0x357   : > { %3351 = vst.msk [vmem:[%s5349_s8 + $0xe8] sm:$0xff] %vm3033_vm4, %v3158_v54  ;;  %v4183_v37 = vadd.f32 %v4104_v15, %v3876_v10  ;;  %v1736_v27 = vpop.f32.mrb[31].mxu1  ;;  %v2930_v2 = vpop.f32.mrb[33].mxu0 }
 0x358   : > { %3350 = vst.msk [vmem:[%s5349_s8 + $0xe0] sm:$0xff] %vm3033_vm4, %v3157_v1  ;;  %v4184_v44 = vadd.f32 %v2918_v39, %v1736_v27 }
 0x359   : > { %v3167_v60 = vadd.f32 %v4183_v37, %v3165_v58 }
 0x35a   : > { %v3166_v4 = vadd.f32 %v4184_v44, %v3165_v58  ;;  %v3879_v32 = vpop.f32.mrb[32].mxu1  ;;  %v4110_v21 = vpop.f32.mrb[34].mxu0 }
 0x35b   : > { %3353 = vst.msk [vmem:[%s5349_s8 + $0xf8] sm:$0xff] %vm3033_vm4, %v3167_v60  ;;  %v4185_v3 = vadd.f32 %v4107_v26, %v3879_v32  ;;  %v1750_v49 = vpop.f32.mrb[33].mxu1  ;;  %v2942_v35 = vpop.f32.mrb[35].mxu0  ;;  %v3228_v26 = vrot.slane %v5458_v46, %v5385_v33  ;;  %v3237_v32 = vrot.slane %v5458_v46, %v5394_v47 }
 0x35c   : > { %3352 = vst.msk [vmem:[%s5349_s8 + $0xf0] sm:$0xff] %vm3033_vm4, %v3166_v4  ;;  %v4186_v55 = vadd.f32 %v2930_v2, %v1750_v49 }
 0x35d   : > { %v3176_v52 = vadd.f32 %v4185_v3, %v3174_v6 }
 0x35e   : > { %v3175_v38 = vadd.f32 %v4186_v55, %v3174_v6  ;;  %v3882_v5 = vpop.f32.mrb[34].mxu1  ;;  %v4113_v63 = vpop.f32.mrb[36].mxu0 }
 0x35f   : > { %3355 = vst.msk [vmem:[%s5349_s8 + $0x108] sm:$0xff] %vm3033_vm4, %v3176_v52  ;;  %v4187_v43 = vadd.f32 %v4110_v21, %v3882_v5  ;;  %v1764_v7 = vpop.f32.mrb[35].mxu1  ;;  %v2954_v62 = vpop.f32.mrb[37].mxu0 }
 0x360   : > { %3354 = vst.msk [vmem:[%s5349_s8 + $0x100] sm:$0xff] %vm3033_vm4, %v3175_v38  ;;  %v4188_v61 = vadd.f32 %v2942_v35, %v1764_v7 }
 0x361   : > { %v3185_v23 = vadd.f32 %v4187_v43, %v3183_v36 }
 0x362   : > { %v3184_v22 = vadd.f32 %v4188_v61, %v3183_v36  ;;  %v3885_v30 = vpop.f32.mrb[36].mxu1  ;;  %v4116_v17 = vpop.f32.mrb[38].mxu0 }
 0x363   : > { %3357 = vst.msk [vmem:[%s5349_s8 + $0x118] sm:$0xff] %vm3033_vm4, %v3185_v23  ;;  %v4189_v42 = vadd.f32 %v4113_v63, %v3885_v30  ;;  %v1778_v13 = vpop.f32.mrb[37].mxu1  ;;  %v2966_v41 = vpop.f32.mrb[39].mxu0 }
 0x364   : > { %3356 = vst.msk [vmem:[%s5349_s8 + $0x110] sm:$0xff] %vm3033_vm4, %v3184_v22  ;;  %v4190_v57 = vadd.f32 %v2954_v62, %v1778_v13 }
 0x365   : > { %v3194_v24 = vadd.f32 %v4189_v42, %v3192_v34 }
 0x366   : > { %v3193_v16 = vadd.f32 %v4190_v57, %v3192_v34  ;;  %v3888_v9 = vpop.f32.mrb[38].mxu1  ;;  %v4119_v29 = vpop.f32.mrb[40].mxu0 }
 0x367   : > { %3359 = vst.msk [vmem:[%s5349_s8 + $0x128] sm:$0xff] %vm3033_vm4, %v3194_v24  ;;  %v4191_v28 = vadd.f32 %v4116_v17, %v3888_v9  ;;  %v1792_v56 = vpop.f32.mrb[39].mxu1  ;;  %v2978_v59 = vpop.f32.mrb[41].mxu0 }
 0x368   : > { %3358 = vst.msk [vmem:[%s5349_s8 + $0x120] sm:$0xff] %vm3033_vm4, %v3193_v16  ;;  %v4192_v0 = vadd.f32 %v2966_v41, %v1792_v56 }
 0x369   : > { %v3203_v48 = vadd.f32 %v4191_v28, %v3201_v12 }
 0x36a   : > { %v3202_v53 = vadd.f32 %v4192_v0, %v3201_v12  ;;  %v3891_v19 = vpop.f32.mrb[40].mxu1  ;;  %v4122_v8 = vpop.f32.mrb[42].mxu0 }
 0x36b   : > { %3361 = vst.msk [vmem:[%s5349_s8 + $0x138] sm:$0xff] %vm3033_vm4, %v3203_v48  ;;  %v4193_v31 = vadd.f32 %v4119_v29, %v3891_v19  ;;  %v1806_v45 = vpop.f32.mrb[41].mxu1  ;;  %v2990_v18 = vpop.f32.mrb[43].mxu0 }
 0x36c   : > { %3360 = vst.msk [vmem:[%s5349_s8 + $0x130] sm:$0xff] %vm3033_vm4, %v3202_v53  ;;  %v4194_v51 = vadd.f32 %v2978_v59, %v1806_v45 }
 0x36d   : > { %v3212_v15 = vadd.f32 %v4193_v31, %v3210_v25 }
 0x36e   : > { %v3211_v50 = vadd.f32 %v4194_v51, %v3210_v25  ;;  %v3894_v39 = vpop.f32.mrb[42].mxu1  ;;  %v4125_v20 = vpop.f32.mrb[44].mxu0 }
 0x36f   : > { %3363 = vst.msk [vmem:[%s5349_s8 + $0x148] sm:$0xff] %vm3033_vm4, %v3212_v15  ;;  %v4195_v11 = vadd.f32 %v4122_v8, %v3894_v39  ;;  %v1820_v54 = vpop.f32.mrb[43].mxu1  ;;  %v3002_v58 = vpop.f32.mrb[45].mxu0 }
 0x370   : > { %3362 = vst.msk [vmem:[%s5349_s8 + $0x140] sm:$0xff] %vm3033_vm4, %v3211_v50  ;;  %v4196_v1 = vadd.f32 %v2990_v18, %v1820_v54 }
 0x371   : > { %v3221_v10 = vadd.f32 %v4195_v11, %v3219_v14 }
 0x372   : > { %v3220_v37 = vadd.f32 %v4196_v1, %v3219_v14  ;;  %v3897_v40 = vpop.f32.mrb[44].mxu1  ;;  %v4128_v27 = vpop.f32.mrb[46].mxu0 }
 0x373   : > { %3365 = vst.msk [vmem:[%s5349_s8 + $0x158] sm:$0xff] %vm3033_vm4, %v3221_v10  ;;  %v4197_v2 = vadd.f32 %v4125_v20, %v3897_v40  ;;  %v1834_v44 = vpop.f32.mrb[45].mxu1  ;;  %v3014_v60 = vpop.f32.mrb[47].mxu0 }
 0x374   : > { %3364 = vst.msk [vmem:[%s5349_s8 + $0x150] sm:$0xff] %vm3033_vm4, %v3220_v37  ;;  %v4198_v6 = vadd.f32 %v3002_v58, %v1834_v44 }
 0x375   : > { %v3230_v4 = vadd.f32 %v4197_v2, %v3228_v26 }
 0x376   : > { %v3229_v33 = vadd.f32 %v4198_v6, %v3228_v26  ;;  %v3900_v21 = vpop.f32.mrb[46].mxu1 }
 0x377   : > { %3367 = vst.msk [vmem:[%s5349_s8 + $0x168] sm:$0xff] %vm3033_vm4, %v3230_v4  ;;  %v4199_v3 = vadd.f32 %v4128_v27, %v3900_v21  ;;  %v1848_v49 = vpop.f32.mrb[47].mxu1 }
 0x378   : > { %3366 = vst.msk [vmem:[%s5349_s8 + $0x160] sm:$0xff] %vm3033_vm4, %v3229_v33  ;;  %v4200_v35 = vadd.f32 %v3014_v60, %v1848_v49 }
 0x379   : > { %v3239_v55 = vadd.f32 %v4199_v3, %v3237_v32 }
 0x37a   : > { %v3238_v52 = vadd.f32 %v4200_v35, %v3237_v32 }
 0x37b   : > { %3369 = vst.msk [vmem:[%s5349_s8 + $0x178] sm:$0xff] %vm3033_vm4, %v3239_v55 }
 0x37c   : > { %3368 = vst.msk [vmem:[%s5349_s8 + $0x170] sm:$0xff] %vm3033_vm4, %v3238_v52 }
 0x37d   : > { %4466 = shalt.err (!%p4463_p3)
}
 0x37e   : > { %s4467_s4 = scalar_lea.hbm %s5517_s27, 6144  ;;  %s4471_s8 = scalar_lea.hbm %s5572_s3, 12288 }
 0x37f   : > { %p4468_p4 = scmp.ne.s32.totalorder %s5517_s27, %s4467_s4  ;;  %p4472_p9 = scmp.lt.u32.totalorder %s5517_s27, %s5572_s3 }
 0x380   : > { %p4473_p10 = scmp.lt.u32.totalorder %s4471_s8, %s4467_s4  ;;  %p4475_p12 = scmp.lt.u32.totalorder %s4467_s4, %s5517_s27 }
 0x381   : > { %p4469_p7 = pnand %p4468_p4, %p4593_p5 }
 0x382   : > { %p4474_p11 = por %p4473_p10, %p4472_p9 }
 0x383   : > { %p4470_p8 = pneg %p4469_p7 }
 0x384   : > { %p4476_p13 = por %p4475_p12, %p4474_p11 }
 0x386   : > { %p4477_p0 = pnand %p4476_p13, %p4470_p8 }
 0x388   : > { %4480 = shalt.err (!%p4477_p0)
}
 0x389   : > { %s4534_s11 = smov 128  }
 0x38a   : > { %4396 = dma.vmem_to_hbm [thread:$0]  (%p4593_p5), %s5519_s20, 6144, %s5517_s27, %s5527_s16, %s4534_s11, %s4534_s11, %s4526_s24  }
 0x38b PF: > { %p4402_p1 = scmp.ge.s32.totalorder %s4515_s15, 2  ;;  %s3272_s17 = sand.u32 1, %s4503_s12  }
 0x38c   : > { %s3273_s19 = scalar_lea.sflag [#allocation3], %s3272_s17 }
 0x38d   : > { %p4399_p2 = pnand %p4402_p1, %p4597_p6 }
 0x38f   : > { %4498 = dma.done.wait (!%p4399_p2), %s3273_s19, 6144  }
 0x390   : > { %4500 = vsyncadd (!%p4399_p2), %s3273_s19, 4294961152  ;;  %p13_p3 = scmp.ge.s32.totalorder %s4580_s18, 4   ;;  %s5707_s12 = smov %s4507_s13 }
 0x391   : > { %s5708_s13 = smov %s4511_s14  ;;  %s5709_s14 = smov %s4591_s21 }
 0x392   : > { %s5710_s15 = smov %s4580_s18  ;;  %15 = sbr.rel (!%p13_p3) target bundleno = 3 (0x3), region = 90 }
 0x399   :  { %3278 = vsyncpa [#allocation3], 1 }
 0x39a   :  { %3280 = vsyncpa [#allocation3 + $0x1], 1 }

</bundles_post_ra>
